<compile_context>
chip_gen: v6e
topology: v6e:2x2x1
jax: 0.10.0
libtpu: 0.0.40
codegen_flags: <defaults>
</compile_context>

<pallas_src>
import functools

import jax
import jax.numpy as jnp
from jax import lax
from jax.experimental import pallas as pl
from jax.experimental.pallas import tpu as pltpu

HIDDEN = 4            # PyTorch hidden_size
INPUT = 1             # PyTorch input_size
H_PAD = 8             # hidden padded to one full sublane group
GATES = 4 * H_PAD     # padded i,f,g,o stack
BLOCK_B = 128         # batch tile (lane axis)


def lstm_linear_kernel(x_ref, wih_ref, b_ref, whh_ref, wlin_ref, blin_ref,
                       o_ref, pre_ref, hs_ref, *, unroll):
    """Fused LSTM recurrence + output Linear for one batch tile.

    x_ref:    (T, 1, Bt)        input sequence (input_size=1 channel kept)
    wih_ref:  (1, GATES, 1)     padded W_ih      (g rows pre-scaled by 2)
    b_ref:    (1, GATES, 1)     padded b_ih+b_hh (g rows pre-scaled by 2)
    whh_ref:  (GATES, HIDDEN)   padded W_hh      (g rows pre-scaled by 2)
    wlin_ref: (1, H_PAD, 1)     padded Linear weight
    blin_ref: (1, 1)            Linear bias
    o_ref:    (T, Bt)           output sequence
    pre_ref:  (T, GATES, Bt)    scratch: per-step input contribution
    hs_ref:   (T, H_PAD, Bt)    scratch: per-step hidden state
    """
    T = x_ref.shape[0]
    Bt = x_ref.shape[2]

    # Bulk pre-pass: x_t * W_ih + b for every timestep (no dependence on h,
    # so it never sits on the recurrence critical path).
    pre_ref[...] = x_ref[...] * wih_ref[...] + b_ref[...]          # (T, GATES, Bt)

    # Hoist lane-broadcasts of the recurrent weight columns out of the loop
    # (JAX does not CSE broadcast_in_dim).
    whh = whh_ref[...]                                             # (GATES, HIDDEN)
    whh_cols = [jnp.broadcast_to(whh[:, k:k + 1], (GATES, Bt))
                for k in range(HIDDEN)]

    h0 = jnp.zeros((H_PAD, Bt), jnp.float32)
    c0 = jnp.zeros((H_PAD, Bt), jnp.float32)

    def step(t, carry):
        h, c = carry
        # Recurrent contribution as HIDDEN broadcast-FMAs on the VPU
        # (K=4 x N=16 is far too small to be worth an MXU push/pop).
        rec = whh_cols[0] * h[0:1, :]
        for k in range(1, HIDDEN):
            rec = rec + whh_cols[k] * h[k:k + 1, :]
        gates = pre_ref[t] + rec                                   # (GATES, Bt)

        # One sigmoid over the whole gate slab; tanh via 2*sigmoid(2x) - 1
        # (the 2x scale on the g rows is baked into the weights/bias).
        s = jax.nn.sigmoid(gates)
        i_g = s[0 * H_PAD:1 * H_PAD, :]
        f_g = s[1 * H_PAD:2 * H_PAD, :]
        g_g = 2.0 * s[2 * H_PAD:3 * H_PAD, :] - 1.0
        o_g = s[3 * H_PAD:4 * H_PAD, :]

        c_new = f_g * c + i_g * g_g
        h_new = o_g * jnp.tanh(c_new)
        hs_ref[t] = h_new                                          # full (8, Bt) tile store
        return h_new, c_new

    lax.fori_loop(0, T, step, (h0, c0), unroll=unroll)

    # Bulk epilogue: output Linear over all timesteps + one lane-dense store.
    hs = hs_ref[...]                                               # (T, H_PAD, Bt)
    y = jnp.sum(hs * wlin_ref[...], axis=1)                        # (T, Bt)
    o_ref[...] = (y + blin_ref[...]).astype(o_ref.dtype)


def _pad_gate_rows(w):
    """Pad each of the 4 (i,f,g,o) row-blocks from HIDDEN to H_PAD rows."""
    pad = [(0, 0)] * w.ndim
    pad[0] = (0, H_PAD - HIDDEN)
    blocks = [jnp.pad(w[q * HIDDEN:(q + 1) * HIDDEN], pad) for q in range(4)]
    return jnp.concatenate(blocks, axis=0)


def _scale_g_rows(w):
    """Scale the g-gate rows by 2 (tanh(x) = 2*sigmoid(2x) - 1 trick)."""
    return w.at[2 * HIDDEN:3 * HIDDEN].multiply(2.0)


def recurrent_nn_forward(x, params, *, block_b=BLOCK_B, unroll=8):
    """x: (B, T, 1) float32 (batch_first, like PyTorch). Returns (B, T, 1)."""
    B, T, _ = x.shape
    x_t1b = jnp.transpose(x, (1, 2, 0)).astype(jnp.float32)        # (T, 1, B)

    # Pad batch to a lane multiple; padded lanes compute harmless values and
    # are sliced off after the kernel.
    n_blocks = -(-B // block_b)
    b_pad = n_blocks * block_b
    if b_pad != B:
        x_t1b = jnp.pad(x_t1b, ((0, 0), (0, 0), (0, b_pad - B)))

    f32 = jnp.float32
    wih = _pad_gate_rows(_scale_g_rows(params["w_ih"].astype(f32)))              # (32, 1)
    whh = _pad_gate_rows(_scale_g_rows(params["w_hh"].astype(f32)))              # (32, 4)
    bias = _pad_gate_rows(
        _scale_g_rows((params["b_ih"] + params["b_hh"]).astype(f32))[:, None])   # (32, 1)
    wlin = jnp.pad(params["w_lin"].astype(f32).T,
                   ((0, H_PAD - HIDDEN), (0, 0)))                                # (8, 1)
    blin = params["b_lin"].astype(f32).reshape(1, 1)                             # (1, 1)

    wih3 = wih[None, :, :]     # (1, GATES, 1)
    b3 = bias[None, :, :]      # (1, GATES, 1)
    wlin3 = wlin[None, :, :]   # (1, H_PAD, 1)

    rep2 = lambda i: (0, 0)
    rep3 = lambda i: (0, 0, 0)

    kernel = functools.partial(lstm_linear_kernel,
                               unroll=max(1, min(unroll, T)))

    out_tb = pl.pallas_call(
        kernel,
        out_shape=jax.ShapeDtypeStruct((T, b_pad), jnp.float32),
        grid=(n_blocks,),
        in_specs=[
            pl.BlockSpec((T, 1, block_b), lambda i: (0, 0, i)),
            pl.BlockSpec((1, GATES, 1), rep3),
            pl.BlockSpec((1, GATES, 1), rep3),
            pl.BlockSpec((GATES, HIDDEN), rep2),
            pl.BlockSpec((1, H_PAD, 1), rep3),
            pl.BlockSpec((1, 1), rep2),
        ],
        out_specs=pl.BlockSpec((T, block_b), lambda i: (0, i)),
        scratch_shapes=[
            pltpu.VMEM((T, GATES, block_b), jnp.float32),
            pltpu.VMEM((T, H_PAD, block_b), jnp.float32),
        ],
        compiler_params=pltpu.CompilerParams(
            dimension_semantics=("parallel",)),
    )(x_t1b, wih3, b3, whh, wlin3, blin)

    # NOTE: for production-sized T, add a trailing "arbitrary" T-tile grid
    # axis with (h, c) carried in scratch so the (T, GATES, Bt) scratch stays
    # within v7x's 64 MiB VMEM.
    return jnp.transpose(out_tb[:, :B], (1, 0))[..., None]          # (B, T, 1)


def init_params(key):
    """Deterministic synthetic parameters matching the PyTorch module shapes."""
    ks = jax.random.split(key, 6)
    u = lambda k, shape: jax.random.uniform(k, shape, jnp.float32, -0.5, 0.5)
    return {
        "w_ih": u(ks[0], (4 * HIDDEN, INPUT)),   # lstm.weight_ih_l0
        "w_hh": u(ks[1], (4 * HIDDEN, HIDDEN)),  # lstm.weight_hh_l0
        "b_ih": u(ks[2], (4 * HIDDEN,)),         # lstm.bias_ih_l0
        "b_hh": u(ks[3], (4 * HIDDEN,)),         # lstm.bias_hh_l0
        "w_lin": u(ks[4], (1, HIDDEN)),          # linear.weight
        "b_lin": u(ks[5], (1,)),                 # linear.bias
    }


def reference_forward(x, params):
    """Pure-JAX reference with PyTorch LSTM semantics (gate order i,f,g,o, zero init)."""
    B, T, _ = x.shape
    H = HIDDEN
    w_ih, w_hh = params["w_ih"], params["w_hh"]
    b = params["b_ih"] + params["b_hh"]

    def step(carry, x_t):
        h, c = carry
        gates = x_t @ w_ih.T + h @ w_hh.T + b
        i = jax.nn.sigmoid(gates[:, 0 * H:1 * H])
        f = jax.nn.sigmoid(gates[:, 1 * H:2 * H])
        g = jnp.tanh(gates[:, 2 * H:3 * H])
        o = jax.nn.sigmoid(gates[:, 3 * H:4 * H])
        c = f * c + i * g
        h = o * jnp.tanh(c)
        return (h, c), h

    x_tbf = jnp.transpose(x, (1, 0, 2))                            # (T, B, 1)
    (_, _), hs = jax.lax.scan(step, (jnp.zeros((B, H)), jnp.zeros((B, H))), x_tbf)
    hs = jnp.transpose(hs, (1, 0, 2))                              # (B, T, H)
    return hs @ params["w_lin"].T + params["b_lin"]                # (B, T, 1)


if __name__ == "__main__":
    key = jax.random.PRNGKey(0)
    k_param, k_x = jax.random.split(key)

    B, T = 2, 8
    params = init_params(k_param)
    x = jax.random.normal(k_x, (B, T, 1), jnp.float32)             # batch_first like PyTorch

    out = jax.block_until_ready(recurrent_nn_forward(x, params))
    ref = jax.block_until_ready(reference_forward(x, params))

    assert out.shape == (B, T, 1), out.shape
    assert jnp.allclose(out, ref, atol=2e-5, rtol=1e-5), (out, ref)
    print("KERNEL_OK")
</pallas_src>

<mosaic_0001>
module attributes {stable_mosaic.version = 11 : i64} {
  func.func @lstm_linear_kernel(%arg0: i32, %arg1: memref<8x1x128xf32, #tpu.memory_space<vmem>>, %arg2: memref<1x32x1xf32, #tpu.memory_space<vmem>>, %arg3: memref<1x32x1xf32, #tpu.memory_space<vmem>>, %arg4: memref<32x4xf32, #tpu.memory_space<vmem>>, %arg5: memref<1x8x1xf32, #tpu.memory_space<vmem>>, %arg6: memref<1x1xf32, #tpu.memory_space<vmem>>, %arg7: memref<8x128xf32, #tpu.memory_space<vmem>>, %arg8: memref<8x32x128xf32, #tpu.memory_space<vmem>>, %arg9: memref<8x8x128xf32, #tpu.memory_space<vmem>>) attributes {dimension_semantics = [#tpu.dimension_semantics<parallel>], iteration_bounds = array<i64: 1>, scalar_prefetch = 0 : i64, scratch_operands = 2 : i64, tpu.core_type = #tpu.core_type<tc>, window_params = [{transform_indices = @transform_0, window_bounds = array<i64: 8, 1, 128>}, {pipeline_mode = #tpu.pipeline_mode<synchronous>, transform_indices = @transform_1, window_bounds = array<i64: 1, 32, 1>}, {pipeline_mode = #tpu.pipeline_mode<synchronous>, transform_indices = @transform_2, window_bounds = array<i64: 1, 32, 1>}, {pipeline_mode = #tpu.pipeline_mode<synchronous>, transform_indices = @transform_3, window_bounds = array<i64: 32, 4>}, {pipeline_mode = #tpu.pipeline_mode<synchronous>, transform_indices = @transform_4, window_bounds = array<i64: 1, 8, 1>}, {pipeline_mode = #tpu.pipeline_mode<synchronous>, transform_indices = @transform_5, window_bounds = array<i64: 1, 1>}, {transform_indices = @transform_6, window_bounds = array<i64: 8, 128>}]} {
    %c0 = arith.constant 0 : index
    %c0_0 = arith.constant 0 : index
    %c0_1 = arith.constant 0 : index
    %0 = vector.load %arg1[%c0, %c0_0, %c0_1] : memref<8x1x128xf32, #tpu.memory_space<vmem>>, vector<8x1x128xf32>
    %c0_2 = arith.constant 0 : index
    %c0_3 = arith.constant 0 : index
    %c0_4 = arith.constant 0 : index
    %1 = vector.load %arg2[%c0_2, %c0_3, %c0_4] : memref<1x32x1xf32, #tpu.memory_space<vmem>>, vector<1x32x1xf32>
    %2 = vector.broadcast %0 : vector<8x1x128xf32> to vector<8x32x128xf32>
    %3 = vector.broadcast %1 : vector<1x32x1xf32> to vector<8x32x128xf32>
    %4 = arith.mulf %2, %3 : vector<8x32x128xf32>
    %c0_5 = arith.constant 0 : index
    %c0_6 = arith.constant 0 : index
    %c0_7 = arith.constant 0 : index
    %5 = vector.load %arg3[%c0_5, %c0_6, %c0_7] : memref<1x32x1xf32, #tpu.memory_space<vmem>>, vector<1x32x1xf32>
    %6 = vector.broadcast %5 : vector<1x32x1xf32> to vector<8x32x128xf32>
    %7 = arith.addf %4, %6 : vector<8x32x128xf32>
    %c0_8 = arith.constant 0 : index
    %c0_9 = arith.constant 0 : index
    %c0_10 = arith.constant 0 : index
    %8 = vector.load %arg8[%c0_8, %c0_9, %c0_10] : memref<8x32x128xf32, #tpu.memory_space<vmem>>, vector<8x32x128xf32>
    tpu.vector_store %arg8[%c0_8, %c0_9, %c0_10], %7 {strides = array<i32>} : memref<8x32x128xf32, #tpu.memory_space<vmem>>, vector<8x32x128xf32>,
    %c0_11 = arith.constant 0 : index
    %c0_12 = arith.constant 0 : index
    %9 = vector.load %arg4[%c0_11, %c0_12] : memref<32x4xf32, #tpu.memory_space<vmem>>, vector<32x4xf32>
    %10 = vector.extract_strided_slice %9 {offsets = [0, 0], sizes = [32, 1], strides = [1, 1]} : vector<32x4xf32> to vector<32x1xf32>
    %11 = vector.shape_cast %10 : vector<32x1xf32> to vector<32x1xf32>
    %12 = vector.broadcast %11 : vector<32x1xf32> to vector<32x128xf32>
    %13 = vector.extract_strided_slice %9 {offsets = [0, 1], sizes = [32, 1], strides = [1, 1]} : vector<32x4xf32> to vector<32x1xf32>
    %14 = vector.shape_cast %13 : vector<32x1xf32> to vector<32x1xf32>
    %15 = vector.broadcast %14 : vector<32x1xf32> to vector<32x128xf32>
    %16 = vector.extract_strided_slice %9 {offsets = [0, 2], sizes = [32, 1], strides = [1, 1]} : vector<32x4xf32> to vector<32x1xf32>
    %17 = vector.shape_cast %16 : vector<32x1xf32> to vector<32x1xf32>
    %18 = vector.broadcast %17 : vector<32x1xf32> to vector<32x128xf32>
    %19 = vector.extract_strided_slice %9 {offsets = [0, 3], sizes = [32, 1], strides = [1, 1]} : vector<32x4xf32> to vector<32x1xf32>
    %20 = vector.shape_cast %19 : vector<32x1xf32> to vector<32x1xf32>
    %21 = vector.broadcast %20 : vector<32x1xf32> to vector<32x128xf32>
    %cst = arith.constant 0.000000e+00 : f32
    %22 = vector.broadcast %cst : f32 to vector<8x128xf32>
    %cst_13 = arith.constant 0.000000e+00 : f32
    %23 = vector.broadcast %cst_13 : f32 to vector<8x128xf32>
    %c0_i32 = arith.constant 0 : i32
    %24 = vector.extract_strided_slice %22 {offsets = [0, 0], sizes = [1, 128], strides = [1, 1]} : vector<8x128xf32> to vector<1x128xf32>
    %25 = vector.broadcast %24 : vector<1x128xf32> to vector<32x128xf32>
    %26 = arith.mulf %12, %25 : vector<32x128xf32>
    %27 = vector.extract_strided_slice %22 {offsets = [1, 0], sizes = [1, 128], strides = [1, 1]} : vector<8x128xf32> to vector<1x128xf32>
    %28 = vector.broadcast %27 : vector<1x128xf32> to vector<32x128xf32>
    %29 = arith.mulf %15, %28 : vector<32x128xf32>
    %30 = arith.addf %26, %29 : vector<32x128xf32>
    %31 = vector.extract_strided_slice %22 {offsets = [2, 0], sizes = [1, 128], strides = [1, 1]} : vector<8x128xf32> to vector<1x128xf32>
    %32 = vector.broadcast %31 : vector<1x128xf32> to vector<32x128xf32>
    %33 = arith.mulf %18, %32 : vector<32x128xf32>
    %34 = arith.addf %30, %33 : vector<32x128xf32>
    %35 = vector.extract_strided_slice %22 {offsets = [3, 0], sizes = [1, 128], strides = [1, 1]} : vector<8x128xf32> to vector<1x128xf32>
    %36 = vector.broadcast %35 : vector<1x128xf32> to vector<32x128xf32>
    %37 = arith.mulf %21, %36 : vector<32x128xf32>
    %38 = arith.addf %34, %37 : vector<32x128xf32>
    %39 = arith.index_cast %c0_i32 : i32 to index
    %c0_14 = arith.constant 0 : index
    %c0_15 = arith.constant 0 : index
    %40 = vector.load %arg8[%39, %c0_14, %c0_15] : memref<8x32x128xf32, #tpu.memory_space<vmem>>, vector<1x32x128xf32>
    %41 = vector.shape_cast %40 : vector<1x32x128xf32> to vector<32x128xf32>
    %42 = arith.addf %41, %38 : vector<32x128xf32>
    %43 = arith.negf %42 : vector<32x128xf32>
    %44 = math.exp %43 : vector<32x128xf32>
    %cst_16 = arith.constant 1.000000e+00 : f32
    %45 = vector.broadcast %cst_16 : f32 to vector<32x128xf32>
    %46 = arith.addf %45, %44 : vector<32x128xf32>
    %47 = arith.divf %45, %46 : vector<32x128xf32>
    %48 = vector.extract_strided_slice %47 {offsets = [0, 0], sizes = [8, 128], strides = [1, 1]} : vector<32x128xf32> to vector<8x128xf32>
    %49 = vector.extract_strided_slice %47 {offsets = [8, 0], sizes = [8, 128], strides = [1, 1]} : vector<32x128xf32> to vector<8x128xf32>
    %50 = vector.extract_strided_slice %47 {offsets = [16, 0], sizes = [8, 128], strides = [1, 1]} : vector<32x128xf32> to vector<8x128xf32>
    %cst_17 = arith.constant 2.000000e+00 : f32
    %51 = vector.broadcast %cst_17 : f32 to vector<8x128xf32>
    %52 = arith.mulf %51, %50 : vector<8x128xf32>
    %cst_18 = arith.constant 1.000000e+00 : f32
    %53 = vector.broadcast %cst_18 : f32 to vector<8x128xf32>
    %54 = arith.subf %52, %53 : vector<8x128xf32>
    %55 = vector.extract_strided_slice %47 {offsets = [24, 0], sizes = [8, 128], strides = [1, 1]} : vector<32x128xf32> to vector<8x128xf32>
    %56 = arith.mulf %49, %23 : vector<8x128xf32>
    %57 = arith.mulf %48, %54 : vector<8x128xf32>
    %58 = arith.addf %56, %57 : vector<8x128xf32>
    %59 = math.tanh %58 : vector<8x128xf32>
    %60 = arith.mulf %55, %59 : vector<8x128xf32>
    %61 = arith.index_cast %c0_i32 : i32 to index
    %c0_19 = arith.constant 0 : index
    %c0_20 = arith.constant 0 : index
    %62 = vector.load %arg9[%61, %c0_19, %c0_20] : memref<8x8x128xf32, #tpu.memory_space<vmem>>, vector<1x8x128xf32>
    %63 = vector.shape_cast %62 : vector<1x8x128xf32> to vector<8x128xf32>
    %64 = vector.shape_cast %60 : vector<8x128xf32> to vector<1x8x128xf32>
    tpu.vector_store %arg9[%61, %c0_19, %c0_20], %64 {strides = array<i32>} : memref<8x8x128xf32, #tpu.memory_space<vmem>>, vector<1x8x128xf32>,
    %c1_i32 = arith.constant 1 : i32
    %65 = vector.extract_strided_slice %60 {offsets = [0, 0], sizes = [1, 128], strides = [1, 1]} : vector<8x128xf32> to vector<1x128xf32>
    %66 = vector.broadcast %65 : vector<1x128xf32> to vector<32x128xf32>
    %67 = arith.mulf %12, %66 : vector<32x128xf32>
    %68 = vector.extract_strided_slice %60 {offsets = [1, 0], sizes = [1, 128], strides = [1, 1]} : vector<8x128xf32> to vector<1x128xf32>
    %69 = vector.broadcast %68 : vector<1x128xf32> to vector<32x128xf32>
    %70 = arith.mulf %15, %69 : vector<32x128xf32>
    %71 = arith.addf %67, %70 : vector<32x128xf32>
    %72 = vector.extract_strided_slice %60 {offsets = [2, 0], sizes = [1, 128], strides = [1, 1]} : vector<8x128xf32> to vector<1x128xf32>
    %73 = vector.broadcast %72 : vector<1x128xf32> to vector<32x128xf32>
    %74 = arith.mulf %18, %73 : vector<32x128xf32>
    %75 = arith.addf %71, %74 : vector<32x128xf32>
    %76 = vector.extract_strided_slice %60 {offsets = [3, 0], sizes = [1, 128], strides = [1, 1]} : vector<8x128xf32> to vector<1x128xf32>
    %77 = vector.broadcast %76 : vector<1x128xf32> to vector<32x128xf32>
    %78 = arith.mulf %21, %77 : vector<32x128xf32>
    %79 = arith.addf %75, %78 : vector<32x128xf32>
    %80 = arith.index_cast %c1_i32 : i32 to index
    %c0_21 = arith.constant 0 : index
    %c0_22 = arith.constant 0 : index
    %81 = vector.load %arg8[%80, %c0_21, %c0_22] : memref<8x32x128xf32, #tpu.memory_space<vmem>>, vector<1x32x128xf32>
    %82 = vector.shape_cast %81 : vector<1x32x128xf32> to vector<32x128xf32>
    %83 = arith.addf %82, %79 : vector<32x128xf32>
    %84 = arith.negf %83 : vector<32x128xf32>
    %85 = math.exp %84 : vector<32x128xf32>
    %cst_23 = arith.constant 1.000000e+00 : f32
    %86 = vector.broadcast %cst_23 : f32 to vector<32x128xf32>
    %87 = arith.addf %86, %85 : vector<32x128xf32>
    %88 = arith.divf %86, %87 : vector<32x128xf32>
    %89 = vector.extract_strided_slice %88 {offsets = [0, 0], sizes = [8, 128], strides = [1, 1]} : vector<32x128xf32> to vector<8x128xf32>
    %90 = vector.extract_strided_slice %88 {offsets = [8, 0], sizes = [8, 128], strides = [1, 1]} : vector<32x128xf32> to vector<8x128xf32>
    %91 = vector.extract_strided_slice %88 {offsets = [16, 0], sizes = [8, 128], strides = [1, 1]} : vector<32x128xf32> to vector<8x128xf32>
    %cst_24 = arith.constant 2.000000e+00 : f32
    %92 = vector.broadcast %cst_24 : f32 to vector<8x128xf32>
    %93 = arith.mulf %92, %91 : vector<8x128xf32>
    %cst_25 = arith.constant 1.000000e+00 : f32
    %94 = vector.broadcast %cst_25 : f32 to vector<8x128xf32>
    %95 = arith.subf %93, %94 : vector<8x128xf32>
    %96 = vector.extract_strided_slice %88 {offsets = [24, 0], sizes = [8, 128], strides = [1, 1]} : vector<32x128xf32> to vector<8x128xf32>
    %97 = arith.mulf %90, %58 : vector<8x128xf32>
    %98 = arith.mulf %89, %95 : vector<8x128xf32>
    %99 = arith.addf %97, %98 : vector<8x128xf32>
    %100 = math.tanh %99 : vector<8x128xf32>
    %101 = arith.mulf %96, %100 : vector<8x128xf32>
    %102 = arith.index_cast %c1_i32 : i32 to index
    %c0_26 = arith.constant 0 : index
    %c0_27 = arith.constant 0 : index
    %103 = vector.load %arg9[%102, %c0_26, %c0_27] : memref<8x8x128xf32, #tpu.memory_space<vmem>>, vector<1x8x128xf32>
    %104 = vector.shape_cast %103 : vector<1x8x128xf32> to vector<8x128xf32>
    %105 = vector.shape_cast %101 : vector<8x128xf32> to vector<1x8x128xf32>
    tpu.vector_store %arg9[%102, %c0_26, %c0_27], %105 {strides = array<i32>} : memref<8x8x128xf32, #tpu.memory_space<vmem>>, vector<1x8x128xf32>,
    %c2_i32 = arith.constant 2 : i32
    %106 = vector.extract_strided_slice %101 {offsets = [0, 0], sizes = [1, 128], strides = [1, 1]} : vector<8x128xf32> to vector<1x128xf32>
    %107 = vector.broadcast %106 : vector<1x128xf32> to vector<32x128xf32>
    %108 = arith.mulf %12, %107 : vector<32x128xf32>
    %109 = vector.extract_strided_slice %101 {offsets = [1, 0], sizes = [1, 128], strides = [1, 1]} : vector<8x128xf32> to vector<1x128xf32>
    %110 = vector.broadcast %109 : vector<1x128xf32> to vector<32x128xf32>
    %111 = arith.mulf %15, %110 : vector<32x128xf32>
    %112 = arith.addf %108, %111 : vector<32x128xf32>
    %113 = vector.extract_strided_slice %101 {offsets = [2, 0], sizes = [1, 128], strides = [1, 1]} : vector<8x128xf32> to vector<1x128xf32>
    %114 = vector.broadcast %113 : vector<1x128xf32> to vector<32x128xf32>
    %115 = arith.mulf %18, %114 : vector<32x128xf32>
    %116 = arith.addf %112, %115 : vector<32x128xf32>
    %117 = vector.extract_strided_slice %101 {offsets = [3, 0], sizes = [1, 128], strides = [1, 1]} : vector<8x128xf32> to vector<1x128xf32>
    %118 = vector.broadcast %117 : vector<1x128xf32> to vector<32x128xf32>
    %119 = arith.mulf %21, %118 : vector<32x128xf32>
    %120 = arith.addf %116, %119 : vector<32x128xf32>
    %121 = arith.index_cast %c2_i32 : i32 to index
    %c0_28 = arith.constant 0 : index
    %c0_29 = arith.constant 0 : index
    %122 = vector.load %arg8[%121, %c0_28, %c0_29] : memref<8x32x128xf32, #tpu.memory_space<vmem>>, vector<1x32x128xf32>
    %123 = vector.shape_cast %122 : vector<1x32x128xf32> to vector<32x128xf32>
    %124 = arith.addf %123, %120 : vector<32x128xf32>
    %125 = arith.negf %124 : vector<32x128xf32>
    %126 = math.exp %125 : vector<32x128xf32>
    %cst_30 = arith.constant 1.000000e+00 : f32
    %127 = vector.broadcast %cst_30 : f32 to vector<32x128xf32>
    %128 = arith.addf %127, %126 : vector<32x128xf32>
    %129 = arith.divf %127, %128 : vector<32x128xf32>
    %130 = vector.extract_strided_slice %129 {offsets = [0, 0], sizes = [8, 128], strides = [1, 1]} : vector<32x128xf32> to vector<8x128xf32>
    %131 = vector.extract_strided_slice %129 {offsets = [8, 0], sizes = [8, 128], strides = [1, 1]} : vector<32x128xf32> to vector<8x128xf32>
    %132 = vector.extract_strided_slice %129 {offsets = [16, 0], sizes = [8, 128], strides = [1, 1]} : vector<32x128xf32> to vector<8x128xf32>
    %cst_31 = arith.constant 2.000000e+00 : f32
    %133 = vector.broadcast %cst_31 : f32 to vector<8x128xf32>
    %134 = arith.mulf %133, %132 : vector<8x128xf32>
    %cst_32 = arith.constant 1.000000e+00 : f32
    %135 = vector.broadcast %cst_32 : f32 to vector<8x128xf32>
    %136 = arith.subf %134, %135 : vector<8x128xf32>
    %137 = vector.extract_strided_slice %129 {offsets = [24, 0], sizes = [8, 128], strides = [1, 1]} : vector<32x128xf32> to vector<8x128xf32>
    %138 = arith.mulf %131, %99 : vector<8x128xf32>
    %139 = arith.mulf %130, %136 : vector<8x128xf32>
    %140 = arith.addf %138, %139 : vector<8x128xf32>
    %141 = math.tanh %140 : vector<8x128xf32>
    %142 = arith.mulf %137, %141 : vector<8x128xf32>
    %143 = arith.index_cast %c2_i32 : i32 to index
    %c0_33 = arith.constant 0 : index
    %c0_34 = arith.constant 0 : index
    %144 = vector.load %arg9[%143, %c0_33, %c0_34] : memref<8x8x128xf32, #tpu.memory_space<vmem>>, vector<1x8x128xf32>
    %145 = vector.shape_cast %144 : vector<1x8x128xf32> to vector<8x128xf32>
    %146 = vector.shape_cast %142 : vector<8x128xf32> to vector<1x8x128xf32>
    tpu.vector_store %arg9[%143, %c0_33, %c0_34], %146 {strides = array<i32>} : memref<8x8x128xf32, #tpu.memory_space<vmem>>, vector<1x8x128xf32>,
    %c3_i32 = arith.constant 3 : i32
    %147 = vector.extract_strided_slice %142 {offsets = [0, 0], sizes = [1, 128], strides = [1, 1]} : vector<8x128xf32> to vector<1x128xf32>
    %148 = vector.broadcast %147 : vector<1x128xf32> to vector<32x128xf32>
    %149 = arith.mulf %12, %148 : vector<32x128xf32>
    %150 = vector.extract_strided_slice %142 {offsets = [1, 0], sizes = [1, 128], strides = [1, 1]} : vector<8x128xf32> to vector<1x128xf32>
    %151 = vector.broadcast %150 : vector<1x128xf32> to vector<32x128xf32>
    %152 = arith.mulf %15, %151 : vector<32x128xf32>
    %153 = arith.addf %149, %152 : vector<32x128xf32>
    %154 = vector.extract_strided_slice %142 {offsets = [2, 0], sizes = [1, 128], strides = [1, 1]} : vector<8x128xf32> to vector<1x128xf32>
    %155 = vector.broadcast %154 : vector<1x128xf32> to vector<32x128xf32>
    %156 = arith.mulf %18, %155 : vector<32x128xf32>
    %157 = arith.addf %153, %156 : vector<32x128xf32>
    %158 = vector.extract_strided_slice %142 {offsets = [3, 0], sizes = [1, 128], strides = [1, 1]} : vector<8x128xf32> to vector<1x128xf32>
    %159 = vector.broadcast %158 : vector<1x128xf32> to vector<32x128xf32>
    %160 = arith.mulf %21, %159 : vector<32x128xf32>
    %161 = arith.addf %157, %160 : vector<32x128xf32>
    %162 = arith.index_cast %c3_i32 : i32 to index
    %c0_35 = arith.constant 0 : index
    %c0_36 = arith.constant 0 : index
    %163 = vector.load %arg8[%162, %c0_35, %c0_36] : memref<8x32x128xf32, #tpu.memory_space<vmem>>, vector<1x32x128xf32>
    %164 = vector.shape_cast %163 : vector<1x32x128xf32> to vector<32x128xf32>
    %165 = arith.addf %164, %161 : vector<32x128xf32>
    %166 = arith.negf %165 : vector<32x128xf32>
    %167 = math.exp %166 : vector<32x128xf32>
    %cst_37 = arith.constant 1.000000e+00 : f32
    %168 = vector.broadcast %cst_37 : f32 to vector<32x128xf32>
    %169 = arith.addf %168, %167 : vector<32x128xf32>
    %170 = arith.divf %168, %169 : vector<32x128xf32>
    %171 = vector.extract_strided_slice %170 {offsets = [0, 0], sizes = [8, 128], strides = [1, 1]} : vector<32x128xf32> to vector<8x128xf32>
    %172 = vector.extract_strided_slice %170 {offsets = [8, 0], sizes = [8, 128], strides = [1, 1]} : vector<32x128xf32> to vector<8x128xf32>
    %173 = vector.extract_strided_slice %170 {offsets = [16, 0], sizes = [8, 128], strides = [1, 1]} : vector<32x128xf32> to vector<8x128xf32>
    %cst_38 = arith.constant 2.000000e+00 : f32
    %174 = vector.broadcast %cst_38 : f32 to vector<8x128xf32>
    %175 = arith.mulf %174, %173 : vector<8x128xf32>
    %cst_39 = arith.constant 1.000000e+00 : f32
    %176 = vector.broadcast %cst_39 : f32 to vector<8x128xf32>
    %177 = arith.subf %175, %176 : vector<8x128xf32>
    %178 = vector.extract_strided_slice %170 {offsets = [24, 0], sizes = [8, 128], strides = [1, 1]} : vector<32x128xf32> to vector<8x128xf32>
    %179 = arith.mulf %172, %140 : vector<8x128xf32>
    %180 = arith.mulf %171, %177 : vector<8x128xf32>
    %181 = arith.addf %179, %180 : vector<8x128xf32>
    %182 = math.tanh %181 : vector<8x128xf32>
    %183 = arith.mulf %178, %182 : vector<8x128xf32>
    %184 = arith.index_cast %c3_i32 : i32 to index
    %c0_40 = arith.constant 0 : index
    %c0_41 = arith.constant 0 : index
    %185 = vector.load %arg9[%184, %c0_40, %c0_41] : memref<8x8x128xf32, #tpu.memory_space<vmem>>, vector<1x8x128xf32>
    %186 = vector.shape_cast %185 : vector<1x8x128xf32> to vector<8x128xf32>
    %187 = vector.shape_cast %183 : vector<8x128xf32> to vector<1x8x128xf32>
    tpu.vector_store %arg9[%184, %c0_40, %c0_41], %187 {strides = array<i32>} : memref<8x8x128xf32, #tpu.memory_space<vmem>>, vector<1x8x128xf32>,
    %c4_i32 = arith.constant 4 : i32
    %188 = vector.extract_strided_slice %183 {offsets = [0, 0], sizes = [1, 128], strides = [1, 1]} : vector<8x128xf32> to vector<1x128xf32>
    %189 = vector.broadcast %188 : vector<1x128xf32> to vector<32x128xf32>
    %190 = arith.mulf %12, %189 : vector<32x128xf32>
    %191 = vector.extract_strided_slice %183 {offsets = [1, 0], sizes = [1, 128], strides = [1, 1]} : vector<8x128xf32> to vector<1x128xf32>
    %192 = vector.broadcast %191 : vector<1x128xf32> to vector<32x128xf32>
    %193 = arith.mulf %15, %192 : vector<32x128xf32>
    %194 = arith.addf %190, %193 : vector<32x128xf32>
    %195 = vector.extract_strided_slice %183 {offsets = [2, 0], sizes = [1, 128], strides = [1, 1]} : vector<8x128xf32> to vector<1x128xf32>
    %196 = vector.broadcast %195 : vector<1x128xf32> to vector<32x128xf32>
    %197 = arith.mulf %18, %196 : vector<32x128xf32>
    %198 = arith.addf %194, %197 : vector<32x128xf32>
    %199 = vector.extract_strided_slice %183 {offsets = [3, 0], sizes = [1, 128], strides = [1, 1]} : vector<8x128xf32> to vector<1x128xf32>
    %200 = vector.broadcast %199 : vector<1x128xf32> to vector<32x128xf32>
    %201 = arith.mulf %21, %200 : vector<32x128xf32>
    %202 = arith.addf %198, %201 : vector<32x128xf32>
    %203 = arith.index_cast %c4_i32 : i32 to index
    %c0_42 = arith.constant 0 : index
    %c0_43 = arith.constant 0 : index
    %204 = vector.load %arg8[%203, %c0_42, %c0_43] : memref<8x32x128xf32, #tpu.memory_space<vmem>>, vector<1x32x128xf32>
    %205 = vector.shape_cast %204 : vector<1x32x128xf32> to vector<32x128xf32>
    %206 = arith.addf %205, %202 : vector<32x128xf32>
    %207 = arith.negf %206 : vector<32x128xf32>
    %208 = math.exp %207 : vector<32x128xf32>
    %cst_44 = arith.constant 1.000000e+00 : f32
    %209 = vector.broadcast %cst_44 : f32 to vector<32x128xf32>
    %210 = arith.addf %209, %208 : vector<32x128xf32>
    %211 = arith.divf %209, %210 : vector<32x128xf32>
    %212 = vector.extract_strided_slice %211 {offsets = [0, 0], sizes = [8, 128], strides = [1, 1]} : vector<32x128xf32> to vector<8x128xf32>
    %213 = vector.extract_strided_slice %211 {offsets = [8, 0], sizes = [8, 128], strides = [1, 1]} : vector<32x128xf32> to vector<8x128xf32>
    %214 = vector.extract_strided_slice %211 {offsets = [16, 0], sizes = [8, 128], strides = [1, 1]} : vector<32x128xf32> to vector<8x128xf32>
    %cst_45 = arith.constant 2.000000e+00 : f32
    %215 = vector.broadcast %cst_45 : f32 to vector<8x128xf32>
    %216 = arith.mulf %215, %214 : vector<8x128xf32>
    %cst_46 = arith.constant 1.000000e+00 : f32
    %217 = vector.broadcast %cst_46 : f32 to vector<8x128xf32>
    %218 = arith.subf %216, %217 : vector<8x128xf32>
    %219 = vector.extract_strided_slice %211 {offsets = [24, 0], sizes = [8, 128], strides = [1, 1]} : vector<32x128xf32> to vector<8x128xf32>
    %220 = arith.mulf %213, %181 : vector<8x128xf32>
    %221 = arith.mulf %212, %218 : vector<8x128xf32>
    %222 = arith.addf %220, %221 : vector<8x128xf32>
    %223 = math.tanh %222 : vector<8x128xf32>
    %224 = arith.mulf %219, %223 : vector<8x128xf32>
    %225 = arith.index_cast %c4_i32 : i32 to index
    %c0_47 = arith.constant 0 : index
    %c0_48 = arith.constant 0 : index
    %226 = vector.load %arg9[%225, %c0_47, %c0_48] : memref<8x8x128xf32, #tpu.memory_space<vmem>>, vector<1x8x128xf32>
    %227 = vector.shape_cast %226 : vector<1x8x128xf32> to vector<8x128xf32>
    %228 = vector.shape_cast %224 : vector<8x128xf32> to vector<1x8x128xf32>
    tpu.vector_store %arg9[%225, %c0_47, %c0_48], %228 {strides = array<i32>} : memref<8x8x128xf32, #tpu.memory_space<vmem>>, vector<1x8x128xf32>,
    %c5_i32 = arith.constant 5 : i32
    %229 = vector.extract_strided_slice %224 {offsets = [0, 0], sizes = [1, 128], strides = [1, 1]} : vector<8x128xf32> to vector<1x128xf32>
    %230 = vector.broadcast %229 : vector<1x128xf32> to vector<32x128xf32>
    %231 = arith.mulf %12, %230 : vector<32x128xf32>
    %232 = vector.extract_strided_slice %224 {offsets = [1, 0], sizes = [1, 128], strides = [1, 1]} : vector<8x128xf32> to vector<1x128xf32>
    %233 = vector.broadcast %232 : vector<1x128xf32> to vector<32x128xf32>
    %234 = arith.mulf %15, %233 : vector<32x128xf32>
    %235 = arith.addf %231, %234 : vector<32x128xf32>
    %236 = vector.extract_strided_slice %224 {offsets = [2, 0], sizes = [1, 128], strides = [1, 1]} : vector<8x128xf32> to vector<1x128xf32>
    %237 = vector.broadcast %236 : vector<1x128xf32> to vector<32x128xf32>
    %238 = arith.mulf %18, %237 : vector<32x128xf32>
    %239 = arith.addf %235, %238 : vector<32x128xf32>
    %240 = vector.extract_strided_slice %224 {offsets = [3, 0], sizes = [1, 128], strides = [1, 1]} : vector<8x128xf32> to vector<1x128xf32>
    %241 = vector.broadcast %240 : vector<1x128xf32> to vector<32x128xf32>
    %242 = arith.mulf %21, %241 : vector<32x128xf32>
    %243 = arith.addf %239, %242 : vector<32x128xf32>
    %244 = arith.index_cast %c5_i32 : i32 to index
    %c0_49 = arith.constant 0 : index
    %c0_50 = arith.constant 0 : index
    %245 = vector.load %arg8[%244, %c0_49, %c0_50] : memref<8x32x128xf32, #tpu.memory_space<vmem>>, vector<1x32x128xf32>
    %246 = vector.shape_cast %245 : vector<1x32x128xf32> to vector<32x128xf32>
    %247 = arith.addf %246, %243 : vector<32x128xf32>
    %248 = arith.negf %247 : vector<32x128xf32>
    %249 = math.exp %248 : vector<32x128xf32>
    %cst_51 = arith.constant 1.000000e+00 : f32
    %250 = vector.broadcast %cst_51 : f32 to vector<32x128xf32>
    %251 = arith.addf %250, %249 : vector<32x128xf32>
    %252 = arith.divf %250, %251 : vector<32x128xf32>
    %253 = vector.extract_strided_slice %252 {offsets = [0, 0], sizes = [8, 128], strides = [1, 1]} : vector<32x128xf32> to vector<8x128xf32>
    %254 = vector.extract_strided_slice %252 {offsets = [8, 0], sizes = [8, 128], strides = [1, 1]} : vector<32x128xf32> to vector<8x128xf32>
    %255 = vector.extract_strided_slice %252 {offsets = [16, 0], sizes = [8, 128], strides = [1, 1]} : vector<32x128xf32> to vector<8x128xf32>
    %cst_52 = arith.constant 2.000000e+00 : f32
    %256 = vector.broadcast %cst_52 : f32 to vector<8x128xf32>
    %257 = arith.mulf %256, %255 : vector<8x128xf32>
    %cst_53 = arith.constant 1.000000e+00 : f32
    %258 = vector.broadcast %cst_53 : f32 to vector<8x128xf32>
    %259 = arith.subf %257, %258 : vector<8x128xf32>
    %260 = vector.extract_strided_slice %252 {offsets = [24, 0], sizes = [8, 128], strides = [1, 1]} : vector<32x128xf32> to vector<8x128xf32>
    %261 = arith.mulf %254, %222 : vector<8x128xf32>
    %262 = arith.mulf %253, %259 : vector<8x128xf32>
    %263 = arith.addf %261, %262 : vector<8x128xf32>
    %264 = math.tanh %263 : vector<8x128xf32>
    %265 = arith.mulf %260, %264 : vector<8x128xf32>
    %266 = arith.index_cast %c5_i32 : i32 to index
    %c0_54 = arith.constant 0 : index
    %c0_55 = arith.constant 0 : index
    %267 = vector.load %arg9[%266, %c0_54, %c0_55] : memref<8x8x128xf32, #tpu.memory_space<vmem>>, vector<1x8x128xf32>
    %268 = vector.shape_cast %267 : vector<1x8x128xf32> to vector<8x128xf32>
    %269 = vector.shape_cast %265 : vector<8x128xf32> to vector<1x8x128xf32>
    tpu.vector_store %arg9[%266, %c0_54, %c0_55], %269 {strides = array<i32>} : memref<8x8x128xf32, #tpu.memory_space<vmem>>, vector<1x8x128xf32>,
    %c6_i32 = arith.constant 6 : i32
    %270 = vector.extract_strided_slice %265 {offsets = [0, 0], sizes = [1, 128], strides = [1, 1]} : vector<8x128xf32> to vector<1x128xf32>
    %271 = vector.broadcast %270 : vector<1x128xf32> to vector<32x128xf32>
    %272 = arith.mulf %12, %271 : vector<32x128xf32>
    %273 = vector.extract_strided_slice %265 {offsets = [1, 0], sizes = [1, 128], strides = [1, 1]} : vector<8x128xf32> to vector<1x128xf32>
    %274 = vector.broadcast %273 : vector<1x128xf32> to vector<32x128xf32>
    %275 = arith.mulf %15, %274 : vector<32x128xf32>
    %276 = arith.addf %272, %275 : vector<32x128xf32>
    %277 = vector.extract_strided_slice %265 {offsets = [2, 0], sizes = [1, 128], strides = [1, 1]} : vector<8x128xf32> to vector<1x128xf32>
    %278 = vector.broadcast %277 : vector<1x128xf32> to vector<32x128xf32>
    %279 = arith.mulf %18, %278 : vector<32x128xf32>
    %280 = arith.addf %276, %279 : vector<32x128xf32>
    %281 = vector.extract_strided_slice %265 {offsets = [3, 0], sizes = [1, 128], strides = [1, 1]} : vector<8x128xf32> to vector<1x128xf32>
    %282 = vector.broadcast %281 : vector<1x128xf32> to vector<32x128xf32>
    %283 = arith.mulf %21, %282 : vector<32x128xf32>
    %284 = arith.addf %280, %283 : vector<32x128xf32>
    %285 = arith.index_cast %c6_i32 : i32 to index
    %c0_56 = arith.constant 0 : index
    %c0_57 = arith.constant 0 : index
    %286 = vector.load %arg8[%285, %c0_56, %c0_57] : memref<8x32x128xf32, #tpu.memory_space<vmem>>, vector<1x32x128xf32>
    %287 = vector.shape_cast %286 : vector<1x32x128xf32> to vector<32x128xf32>
    %288 = arith.addf %287, %284 : vector<32x128xf32>
    %289 = arith.negf %288 : vector<32x128xf32>
    %290 = math.exp %289 : vector<32x128xf32>
    %cst_58 = arith.constant 1.000000e+00 : f32
    %291 = vector.broadcast %cst_58 : f32 to vector<32x128xf32>
    %292 = arith.addf %291, %290 : vector<32x128xf32>
    %293 = arith.divf %291, %292 : vector<32x128xf32>
    %294 = vector.extract_strided_slice %293 {offsets = [0, 0], sizes = [8, 128], strides = [1, 1]} : vector<32x128xf32> to vector<8x128xf32>
    %295 = vector.extract_strided_slice %293 {offsets = [8, 0], sizes = [8, 128], strides = [1, 1]} : vector<32x128xf32> to vector<8x128xf32>
    %296 = vector.extract_strided_slice %293 {offsets = [16, 0], sizes = [8, 128], strides = [1, 1]} : vector<32x128xf32> to vector<8x128xf32>
    %cst_59 = arith.constant 2.000000e+00 : f32
    %297 = vector.broadcast %cst_59 : f32 to vector<8x128xf32>
    %298 = arith.mulf %297, %296 : vector<8x128xf32>
    %cst_60 = arith.constant 1.000000e+00 : f32
    %299 = vector.broadcast %cst_60 : f32 to vector<8x128xf32>
    %300 = arith.subf %298, %299 : vector<8x128xf32>
    %301 = vector.extract_strided_slice %293 {offsets = [24, 0], sizes = [8, 128], strides = [1, 1]} : vector<32x128xf32> to vector<8x128xf32>
    %302 = arith.mulf %295, %263 : vector<8x128xf32>
    %303 = arith.mulf %294, %300 : vector<8x128xf32>
    %304 = arith.addf %302, %303 : vector<8x128xf32>
    %305 = math.tanh %304 : vector<8x128xf32>
    %306 = arith.mulf %301, %305 : vector<8x128xf32>
    %307 = arith.index_cast %c6_i32 : i32 to index
    %c0_61 = arith.constant 0 : index
    %c0_62 = arith.constant 0 : index
    %308 = vector.load %arg9[%307, %c0_61, %c0_62] : memref<8x8x128xf32, #tpu.memory_space<vmem>>, vector<1x8x128xf32>
    %309 = vector.shape_cast %308 : vector<1x8x128xf32> to vector<8x128xf32>
    %310 = vector.shape_cast %306 : vector<8x128xf32> to vector<1x8x128xf32>
    tpu.vector_store %arg9[%307, %c0_61, %c0_62], %310 {strides = array<i32>} : memref<8x8x128xf32, #tpu.memory_space<vmem>>, vector<1x8x128xf32>,
    %c7_i32 = arith.constant 7 : i32
    %311 = vector.extract_strided_slice %306 {offsets = [0, 0], sizes = [1, 128], strides = [1, 1]} : vector<8x128xf32> to vector<1x128xf32>
    %312 = vector.broadcast %311 : vector<1x128xf32> to vector<32x128xf32>
    %313 = arith.mulf %12, %312 : vector<32x128xf32>
    %314 = vector.extract_strided_slice %306 {offsets = [1, 0], sizes = [1, 128], strides = [1, 1]} : vector<8x128xf32> to vector<1x128xf32>
    %315 = vector.broadcast %314 : vector<1x128xf32> to vector<32x128xf32>
    %316 = arith.mulf %15, %315 : vector<32x128xf32>
    %317 = arith.addf %313, %316 : vector<32x128xf32>
    %318 = vector.extract_strided_slice %306 {offsets = [2, 0], sizes = [1, 128], strides = [1, 1]} : vector<8x128xf32> to vector<1x128xf32>
    %319 = vector.broadcast %318 : vector<1x128xf32> to vector<32x128xf32>
    %320 = arith.mulf %18, %319 : vector<32x128xf32>
    %321 = arith.addf %317, %320 : vector<32x128xf32>
    %322 = vector.extract_strided_slice %306 {offsets = [3, 0], sizes = [1, 128], strides = [1, 1]} : vector<8x128xf32> to vector<1x128xf32>
    %323 = vector.broadcast %322 : vector<1x128xf32> to vector<32x128xf32>
    %324 = arith.mulf %21, %323 : vector<32x128xf32>
    %325 = arith.addf %321, %324 : vector<32x128xf32>
    %326 = arith.index_cast %c7_i32 : i32 to index
    %c0_63 = arith.constant 0 : index
    %c0_64 = arith.constant 0 : index
    %327 = vector.load %arg8[%326, %c0_63, %c0_64] : memref<8x32x128xf32, #tpu.memory_space<vmem>>, vector<1x32x128xf32>
    %328 = vector.shape_cast %327 : vector<1x32x128xf32> to vector<32x128xf32>
    %329 = arith.addf %328, %325 : vector<32x128xf32>
    %330 = arith.negf %329 : vector<32x128xf32>
    %331 = math.exp %330 : vector<32x128xf32>
    %cst_65 = arith.constant 1.000000e+00 : f32
    %332 = vector.broadcast %cst_65 : f32 to vector<32x128xf32>
    %333 = arith.addf %332, %331 : vector<32x128xf32>
    %334 = arith.divf %332, %333 : vector<32x128xf32>
    %335 = vector.extract_strided_slice %334 {offsets = [0, 0], sizes = [8, 128], strides = [1, 1]} : vector<32x128xf32> to vector<8x128xf32>
    %336 = vector.extract_strided_slice %334 {offsets = [8, 0], sizes = [8, 128], strides = [1, 1]} : vector<32x128xf32> to vector<8x128xf32>
    %337 = vector.extract_strided_slice %334 {offsets = [16, 0], sizes = [8, 128], strides = [1, 1]} : vector<32x128xf32> to vector<8x128xf32>
    %cst_66 = arith.constant 2.000000e+00 : f32
    %338 = vector.broadcast %cst_66 : f32 to vector<8x128xf32>
    %339 = arith.mulf %338, %337 : vector<8x128xf32>
    %cst_67 = arith.constant 1.000000e+00 : f32
    %340 = vector.broadcast %cst_67 : f32 to vector<8x128xf32>
    %341 = arith.subf %339, %340 : vector<8x128xf32>
    %342 = vector.extract_strided_slice %334 {offsets = [24, 0], sizes = [8, 128], strides = [1, 1]} : vector<32x128xf32> to vector<8x128xf32>
    %343 = arith.mulf %336, %304 : vector<8x128xf32>
    %344 = arith.mulf %335, %341 : vector<8x128xf32>
    %345 = arith.addf %343, %344 : vector<8x128xf32>
    %346 = math.tanh %345 : vector<8x128xf32>
    %347 = arith.mulf %342, %346 : vector<8x128xf32>
    %348 = arith.index_cast %c7_i32 : i32 to index
    %c0_68 = arith.constant 0 : index
    %c0_69 = arith.constant 0 : index
    %349 = vector.load %arg9[%348, %c0_68, %c0_69] : memref<8x8x128xf32, #tpu.memory_space<vmem>>, vector<1x8x128xf32>
    %350 = vector.shape_cast %349 : vector<1x8x128xf32> to vector<8x128xf32>
    %351 = vector.shape_cast %347 : vector<8x128xf32> to vector<1x8x128xf32>
    tpu.vector_store %arg9[%348, %c0_68, %c0_69], %351 {strides = array<i32>} : memref<8x8x128xf32, #tpu.memory_space<vmem>>, vector<1x8x128xf32>,
    %c8_i32 = arith.constant 8 : i32
    %c0_70 = arith.constant 0 : index
    %c0_71 = arith.constant 0 : index
    %c0_72 = arith.constant 0 : index
    %352 = vector.load %arg9[%c0_70, %c0_71, %c0_72] : memref<8x8x128xf32, #tpu.memory_space<vmem>>, vector<8x8x128xf32>
    %c0_73 = arith.constant 0 : index
    %c0_74 = arith.constant 0 : index
    %c0_75 = arith.constant 0 : index
    %353 = vector.load %arg5[%c0_73, %c0_74, %c0_75] : memref<1x8x1xf32, #tpu.memory_space<vmem>>, vector<1x8x1xf32>
    %354 = vector.broadcast %353 : vector<1x8x1xf32> to vector<8x8x128xf32>
    %355 = arith.mulf %352, %354 : vector<8x8x128xf32>
    %cst_76 = arith.constant dense<0.000000e+00> : vector<8x128xf32>
    %356 = vector.multi_reduction <add>, %355, %cst_76 [1] : vector<8x8x128xf32> to vector<8x128xf32>
    %c0_77 = arith.constant 0 : index
    %c0_78 = arith.constant 0 : index
    %357 = vector.load %arg6[%c0_77, %c0_78] : memref<1x1xf32, #tpu.memory_space<vmem>>, vector<1x1xf32>
    %358 = vector.broadcast %357 : vector<1x1xf32> to vector<8x128xf32>
    %359 = arith.addf %356, %358 : vector<8x128xf32>
    %c0_79 = arith.constant 0 : index
    %c0_80 = arith.constant 0 : index
    %360 = vector.load %arg7[%c0_79, %c0_80] : memref<8x128xf32, #tpu.memory_space<vmem>>, vector<8x128xf32>
    tpu.vector_store %arg7[%c0_79, %c0_80], %359 {strides = array<i32>} : memref<8x128xf32, #tpu.memory_space<vmem>>, vector<8x128xf32>,
    return
  }
  func.func @transform_0(%arg0: i32) -> (i32, i32, i32) {
    %c0_i32 = arith.constant 0 : i32
    %c0_i32_0 = arith.constant 0 : i32
    %c0_i32_1 = arith.constant 0 : i32
    return %c0_i32, %c0_i32_0, %arg0 : i32, i32, i32
  }
  func.func @transform_1(%arg0: i32) -> (i32, i32, i32) {
    %c0_i32 = arith.constant 0 : i32
    %c0_i32_0 = arith.constant 0 : i32
    %c0_i32_1 = arith.constant 0 : i32
    %c0_i32_2 = arith.constant 0 : i32
    return %c0_i32, %c0_i32_0, %c0_i32_1 : i32, i32, i32
  }
  func.func @transform_2(%arg0: i32) -> (i32, i32, i32) {
    %c0_i32 = arith.constant 0 : i32
    %c0_i32_0 = arith.constant 0 : i32
    %c0_i32_1 = arith.constant 0 : i32
    %c0_i32_2 = arith.constant 0 : i32
    return %c0_i32, %c0_i32_0, %c0_i32_1 : i32, i32, i32
  }
  func.func @transform_3(%arg0: i32) -> (i32, i32) {
    %c0_i32 = arith.constant 0 : i32
    %c0_i32_0 = arith.constant 0 : i32
    %c0_i32_1 = arith.constant 0 : i32
    return %c0_i32, %c0_i32_0 : i32, i32
  }
  func.func @transform_4(%arg0: i32) -> (i32, i32, i32) {
    %c0_i32 = arith.constant 0 : i32
    %c0_i32_0 = arith.constant 0 : i32
    %c0_i32_1 = arith.constant 0 : i32
    %c0_i32_2 = arith.constant 0 : i32
    return %c0_i32, %c0_i32_0, %c0_i32_1 : i32, i32, i32
  }
  func.func @transform_5(%arg0: i32) -> (i32, i32) {
    %c0_i32 = arith.constant 0 : i32
    %c0_i32_0 = arith.constant 0 : i32
    %c0_i32_1 = arith.constant 0 : i32
    return %c0_i32, %c0_i32_0 : i32, i32
  }
  func.func @transform_6(%arg0: i32) -> (i32, i32) {
    %c0_i32 = arith.constant 0 : i32
    %c0_i32_0 = arith.constant 0 : i32
    return %c0_i32, %arg0 : i32, i32
  }
}

</mosaic_0001>

<bundles_post_ra>
// kernel: tpu_custom_call.1
= control target key start
LH: loop header
LB: loop body
LE: loop exit
PB: predicated region body
PF: predicated region fallthrough
CT: control target
= control target key end

     0   :  { %s1840_s0 = inlined_call_operand.vmem [shape: f32[8,1,128], index: 0, kind: input, shape index: {}]   ;;  %s1841_s1 = inlined_call_operand.vmem [shape: f32[1,32,1], index: 1, kind: input, shape index: {}]   ;;  %s1842_s2 = inlined_call_operand.vmem [shape: f32[1,32,1], index: 2, kind: input, shape index: {}]   ;;  %s1843_s3 = inlined_call_operand.vmem [shape: f32[32,4], index: 3, kind: input, shape index: {}]   ;;  %s1844_s4 = inlined_call_operand.vmem [shape: f32[1,8,1], index: 4, kind: input, shape index: {}]   ;;  %s1845_s5 = inlined_call_operand.<no memory space> [shape: f32[1,1], index: 5, kind: input, shape index: {}]   ;;  %s1846_s6 = inlined_call_operand.hbm [shape: f32[8,128], index: 6, kind: output, shape index: {}]  }
   0x1   :  { %v11_v0 = vstv %s1845_s5 }
   0x2   :  { %12 = vst [vmem:[#allocation4] sm:$0x1] %v11_v0 }
   0x3   :  { %v228_v1 = vld [vmem:[%s1843_s3 + $0x10] sm:$0xff]  ;;  %v1333_v2 = vmov 2   ;;  %v1334_v3 = vmov 1   ;;  %v1335_v5 = vmov 0  }
   0x4   :  { %1150 = vset.pattern.permute.xlu1 %v1333_v2  ;;  %1148 = vset.pattern.permute.xlu0 %v1334_v3  ;;  %v36_v4 = vld [vmem:[%s1841_s1 + $0x10] sm:$0xff] }
   0x5   :  { %275 = vperm.xlu1 %1150, %v228_v1   ;;  %259 = vperm.xlu0 %1148, %v228_v1  }
   0x9   :  { %1151 = vset.pattern.permute.xlu1 %v1335_v5  ;;  %1149 = vset.pattern.permute.xlu0 %v1335_v5 }
   0xa   :  { %242 = vperm.xlu0 %1149, %v228_v1   ;;  %98 = vperm.xlu1 %1151, %v36_v4  }
   0xb   :  { %13 = vsyncpa [#allocation6], 0  ;;  %v227_v6 = vld [vmem:[%s1843_s3 + $0x8] sm:$0xff]  ;;  %v226_v7 = vld [vmem:[%s1843_s3] sm:$0xff]  ;;  %v1336_v8 = vmov 3   ;;  %vm1064_vm0 = vcmask 1041409  }
   0xc   :  { %v140_v9 = vld [vmem:[%s1842_s2 + $0x10] sm:$0xff]  ;;  %v139_v10 = vld [vmem:[%s1842_s2 + $0x8] sm:$0xff]  ;;  %v34_v11 = vld [vmem:[%s1841_s1] sm:$0xff]  ;;  %vm1066_vm1 = vcmask 1042434   ;;  %vm1068_vm2 = vcmask 1043459   ;;  %vm1070_vm3 = vcmask 1044484  }
   0xd   :  { %v229_v12 = vld [vmem:[%s1843_s3 + $0x18] sm:$0xff]  ;;  %v35_v13 = vld [vmem:[%s1841_s1 + $0x8] sm:$0xff]  ;;  %v138_v15 = vld [vmem:[%s1842_s2] sm:$0xff]  ;;  %vm1072_vm4 = vcmask 1045509   ;;  %vm1074_vm5 = vcmask 1046534   ;;  %vm1076_vm6 = vcmask 1047559  }
   0xe   :  { %237 = vperm.xlu0 %1149, %v227_v6   ;;  %232 = vperm.xlu1 %1151, %v226_v7   ;;  %v141_v14 = vld [vmem:[%s1842_s2 + $0x18] sm:$0xff]  ;;  %v976_v17 = vld [vmem:[%s1844_s4] sm:$0xff] }
   0xf   :  { %v37_v16 = vld [vmem:[%s1841_s1 + $0x18] sm:$0xff]  ;;  %v1142_v18 = vld [vmem:[#allocation4] ss:$0 sm:$0xff]  ;;  %v1430_v26 = vld [vmem:[%s1840_s0 + $0x1] ss:$0 sm:$0xff] }
  0x10   :  { %v1435_v27 = vld [vmem:[%s1840_s0 + $0x2] ss:$0 sm:$0xff]  ;;  %v1444_v30 = vld [vmem:[%s1840_s0 + $0x3] ss:$0 sm:$0xff]  ;;  %v1449_v31 = vld [vmem:[%s1840_s0 + $0x4] ss:$0 sm:$0xff] }
  0x11   :  { %v1454_v32 = vld [vmem:[%s1840_s0 + $0x5] ss:$0 sm:$0xff]  ;;  %v1461_v35 = vld [vmem:[%s1840_s0 + $0x6] ss:$0 sm:$0xff]  ;;  %v1466_v36 = vld [vmem:[%s1840_s0 + $0x7] ss:$0 sm:$0xff] }
  0x12   :  { %1155 = vset.pattern.permute.xlu0 %v1333_v2  ;;  %1152 = vset.pattern.permute.xlu1 %v1334_v3  ;;  %v1478_v46 = vld [vmem:[%s1840_s0] ss:$0 sm:$0xff]  ;;  %s1337_s0 = smov [#allocation5]  }
  0x13   :  { %271 = vperm.xlu0 %1155, %v227_v6   ;;  %251 = vperm.xlu1 %1152, %v226_v7   ;;  %s1086_s11 = sshll.u32 %s1337_s0, 4  ;;  %s1087_s11 = int_to_ptr.vmem [resolvable:$true] %s1086_s11 }
  0x14   :  { %s1311_s12 = scalar_lea.vmem %s1087_s11, 128  ;;  %p1316_p1 = scmp.lt.s32.totalorder %s1087_s11, %s1087_s11 }
  0x15   :  { %p1312_p0 = scmp.ne.s32.totalorder %s1087_s11, %s1311_s12  ;;  %p1317_p2 = scmp.lt.s32.totalorder %s1311_s12, %s1311_s12 }
  0x17   :  { %1156 = vset.pattern.permute.xlu0 %v1336_v8  ;;  %255 = vperm.xlu1 %1152, %v227_v6   ;;  %p1318_p3 = por %p1317_p2, %p1316_p1 }
  0x18   :  { %291 = vperm.xlu0 %1156, %v228_v1  }
  0x19   :  { %p1319_p4 = pnand %p1318_p3, %p1312_p0 }
  0x1b   :  { %1153 = vset.pattern.permute.xlu1 %v1335_v5 }
  0x1c   :  { %154 = vperm.xlu1 %1153, %v140_v9   ;;  %283 = vperm.xlu0 %1156, %v226_v7  }
  0x20   :  { %1154 = vset.pattern.permute.xlu1 %v1333_v2  ;;  %1160 = vset.pattern.permute.xlu0 %v1335_v5 }
  0x21   :  { %267 = vperm.xlu1 %1154, %v226_v7   ;;  %149 = vperm.xlu0 %1160, %v139_v10  }
  0x25   :  { %1157 = vset.pattern.permute.xlu1 %v1335_v5  ;;  %1162 = vset.pattern.permute.xlu0 %v1333_v2 }
  0x26   :  { %88 = vperm.xlu1 %1157, %v34_v11   ;;  %279 = vperm.xlu0 %1162, %v229_v12  }
  0x2a   :  { %93 = vperm.xlu1 %1157, %v35_v13   ;;  %1165 = vset.pattern.permute.xlu0 %v1335_v5 }
  0x2b   :  { %159 = vperm.xlu0 %1165, %v141_v14  }
  0x2e   :  { %1158 = vset.pattern.permute.xlu1 %v1336_v8 }
  0x2f   :  { %287 = vperm.xlu1 %1158, %v227_v6  }
  0x33   :  { %1159 = vset.pattern.permute.xlu1 %v1335_v5 }
  0x34   :  { %144 = vperm.xlu1 %1159, %v138_v15  }
  0x38   :  { %247 = vperm.xlu1 %1159, %v229_v12  }
  0x3c   :  { %1161 = vset.pattern.permute.xlu1 %v1334_v3 }
  0x3d   :  { %263 = vperm.xlu1 %1161, %v229_v12  }
  0x41   :  { %1163 = vset.pattern.permute.xlu1 %v1335_v5 }
  0x42   :  { %103 = vperm.xlu1 %1163, %v37_v16  }
  0x46   :  { %1164 = vset.pattern.permute.xlu1 %v1336_v8 }
  0x47   :  { %295 = vperm.xlu1 %1164, %v229_v12  }
  0x4b   :  { %1166 = vset.pattern.permute.xlu1 %v1335_v5 }
  0x4c   :  { %979 = vperm.xlu1 %1166, %v976_v17  }
  0x50   :  { %1045 = vperm.xlu1 %1166, %v1142_v18  }
  0x80   :  { %v1415_v19 = vpop.permute.xlu1 %275  ;;  %v1417_v20 = vpop.permute.xlu0 %259 }
  0x81   :  { %v304_v33 = vmul.f32 0.0, %v1417_v20  ;;  %v312_v55 = vmul.f32 0.0, %v1415_v19 }
  0x85   :  { %v99_v21 = vpop.permute.xlu1 %98  ;;  %v1419_v22 = vpop.permute.xlu0 %242 }
  0x86   :  { %v300_v34 = vmul.f32 0.0, %v1419_v22  ;;  %v112_v37 = vmul.f32 %v1430_v26, %v99_v21  ;;  %v116_v38 = vmul.f32 %v1435_v27, %v99_v21  ;;  %v120_v39 = vmul.f32 %v1444_v30, %v99_v21 }
  0x87   :  { %v124_v40 = vmul.f32 %v1449_v31, %v99_v21  ;;  %v128_v41 = vmul.f32 %v1454_v32, %v99_v21  ;;  %v132_v42 = vmul.f32 %v1461_v35, %v99_v21  ;;  %v136_v43 = vmul.f32 %v1466_v36, %v99_v21 }
  0x88   :  { %v308_v45 = vadd.f32 %v304_v33, %v300_v34  ;;  %v108_v56 = vmul.f32 %v1478_v46, %v99_v21 }
  0x89   :  { %v1421_v23 = vpop.permute.xlu1 %232  ;;  %v1423_v24 = vpop.permute.xlu0 %237 }
  0x8a   :  { %v316_v59 = vadd.f32 %v312_v55, %v308_v45  ;;  %v299_v63 = vmul.f32 0.0, %v1423_v24  ;;  %v298_v4 = vmul.f32 0.0, %v1421_v23 }
  0x8e   :  { %v1425_v25 = vpop.permute.xlu1 %251  ;;  %v1437_v28 = vpop.permute.xlu0 %271 }
  0x8f   :  { %v302_v62 = vmul.f32 0.0, %v1425_v25  ;;  %v311_v7 = vmul.f32 0.0, %v1437_v28 }
  0x91   :  { %v306_v6 = vadd.f32 %v302_v62, %v298_v4 }
  0x92   :  { %v1439_v29 = vpop.permute.xlu1 %255 }
  0x93   :  { %v1480_v47 = vpop.permute.xlu0 %291  ;;  %v303_v0 = vmul.f32 0.0, %v1439_v29 }
  0x94   :  { %v320_v57 = vmul.f32 0.0, %v1480_v47 }
  0x95   :  { %v307_v8 = vadd.f32 %v303_v0, %v299_v63 }
  0x96   :  { %v324_v61 = vadd.f32 %v320_v57, %v316_v59 }
  0x97   :  { %v155_v44 = vpop.permute.xlu1 %154  ;;  %v1504_v2 = vpop.permute.xlu0 %283  ;;  %v315_v45 = vadd.f32 %v311_v7, %v307_v8 }
  0x98   :  { %v1482_v48 = vadd.f32 %v155_v44, %v112_v37  ;;  %v1484_v49 = vadd.f32 %v155_v44, %v116_v38  ;;  %v1486_v50 = vadd.f32 %v155_v44, %v120_v39  ;;  %v1488_v51 = vadd.f32 %v155_v44, %v124_v40 }
  0x99   :  { %v1490_v52 = vadd.f32 %v155_v44, %v128_v41  ;;  %v1492_v53 = vadd.f32 %v155_v44, %v132_v42  ;;  %v1494_v54 = vadd.f32 %v155_v44, %v136_v43  ;;  %v164_v60 = vadd.f32 %v155_v44, %v108_v56 }
  0x9a   :  { %1847 = vst [vmem:[#allocation8_spill] sm:$0xff] %v1488_v51  ;;  %v318_v10 = vmul.f32 0.0, %v1504_v2 }
  0x9b   :  { %1848 = vst [vmem:[#allocation9_spill] sm:$0xff] %v1490_v52  ;;  %1849 = vst [vmem:[#allocation10_spill] sm:$0xff] %v1492_v53  ;;  %v332_v1 = vadd.f32 %v324_v61, %v164_v60 }
  0x9c   :  { %1850 = vst [vmem:[#allocation11_spill] sm:$0xff] %v1494_v54  ;;  %v1499_v58 = vpop.permute.xlu1 %267  ;;  %v150_v12 = vpop.permute.xlu0 %149 }
  0x9d   :  { %v310_v5 = vmul.f32 0.0, %v1499_v58  ;;  %v1104_v9 = vmul.f32 -1.442695, %v332_v1 }
  0x9f   :  { %v314_v13 = vadd.f32 %v310_v5, %v306_v6  ;;  %1167 = vpow2.f32 %v1104_v9 }
  0xa1   :  { %v89_v3 = vpop.permute.xlu1 %88  ;;  %v322_v56 = vadd.f32 %v318_v10, %v314_v13 }
  0xa2   :  { %v106_v57 = vmul.f32 %v1478_v46, %v89_v3  ;;  %v110_v61 = vmul.f32 %v1430_v26, %v89_v3  ;;  %v114_v62 = vmul.f32 %v1435_v27, %v89_v3  ;;  %v118_v63 = vmul.f32 %v1444_v30, %v89_v3 }
  0xa3   :  { %v122_v0 = vmul.f32 %v1449_v31, %v89_v3  ;;  %v126_v1 = vmul.f32 %v1454_v32, %v89_v3  ;;  %v130_v4 = vmul.f32 %v1461_v35, %v89_v3  ;;  %v134_v5 = vmul.f32 %v1466_v36, %v89_v3 }
  0xa5   :  { %v94_v11 = vpop.permute.xlu1 %93 }
  0xa6   :  { %v111_v14 = vmul.f32 %v1430_v26, %v94_v11  ;;  %v115_v15 = vmul.f32 %v1435_v27, %v94_v11  ;;  %v119_v16 = vmul.f32 %v1444_v30, %v94_v11  ;;  %v123_v17 = vmul.f32 %v1449_v31, %v94_v11 }
  0xa7   :  { %v127_v18 = vmul.f32 %v1454_v32, %v94_v11  ;;  %v131_v21 = vmul.f32 %v1461_v35, %v94_v11  ;;  %v135_v33 = vmul.f32 %v1466_v36, %v94_v11  ;;  %v107_v34 = vmul.f32 %v1478_v46, %v94_v11 }
  0xa8   :  { %v1518_v37 = vadd.f32 %v150_v12, %v111_v14  ;;  %v1520_v38 = vadd.f32 %v150_v12, %v115_v15  ;;  %v1522_v39 = vadd.f32 %v150_v12, %v119_v16  ;;  %v1524_v40 = vadd.f32 %v150_v12, %v123_v17 }
  0xa9   :  { %v1526_v41 = vadd.f32 %v150_v12, %v127_v18  ;;  %v1528_v42 = vadd.f32 %v150_v12, %v131_v21  ;;  %v1530_v43 = vadd.f32 %v150_v12, %v135_v33  ;;  %v163_v59 = vadd.f32 %v150_v12, %v107_v34  ;;  %v1559_v33 = vpop.permute.xlu0 %279 }
  0xaa   :  { %v1532_v44 = vpop.permute.xlu1 %287 }
  0xab   :  { %1851 = vst [vmem:[#allocation12_spill] sm:$0xff] %v1526_v41  ;;  %1852 = vst [vmem:[#allocation13_spill] sm:$0xff] %v1528_v42  ;;  %v319_v55 = vmul.f32 0.0, %v1532_v44 }
  0xac   :  { %1853 = vst [vmem:[#allocation14_spill] sm:$0xff] %v1530_v43  ;;  %v1168_v21 = vpop.eup %1167 }
  0xad   :  { %v323_v60 = vadd.f32 %v319_v55, %v315_v45  ;;  %v348_v45 = vadd.f32 1.0, %v1168_v21 }
  0xaf   :  { %v331_v6 = vadd.f32 %v323_v60, %v163_v59  ;;  %v145_v7 = vpop.permute.xlu1 %144  ;;  %v313_v59 = vmul.f32 0.0, %v1559_v33 }
  0xb0   :  { %v162_v8 = vadd.f32 %v145_v7, %v106_v57  ;;  %v1543_v9 = vadd.f32 %v145_v7, %v110_v61  ;;  %v1545_v10 = vadd.f32 %v145_v7, %v114_v62  ;;  %v1547_v11 = vadd.f32 %v145_v7, %v118_v63  ;;  %v160_v61 = vpop.permute.xlu0 %159 }
  0xb1   :  { %v1103_v12 = vmul.f32 -1.442695, %v331_v6  ;;  %v1549_v13 = vadd.f32 %v145_v7, %v122_v0  ;;  %v1551_v14 = vadd.f32 %v145_v7, %v126_v1  ;;  %v1553_v15 = vadd.f32 %v145_v7, %v130_v4 }
  0xb2   :  { %v1555_v16 = vadd.f32 %v145_v7, %v134_v5  ;;  %v330_v17 = vadd.f32 %v322_v56, %v162_v8 }
  0xb3   :  { %1854 = vst [vmem:[#allocation15_spill] sm:$0xff] %v1551_v14  ;;  %1855 = vst [vmem:[#allocation16_spill] sm:$0xff] %v1553_v15  ;;  %1169 = vpow2.f32 %v1103_v12  ;;  %v1557_v3 = vpop.permute.xlu1 %247 }
  0xb4   :  { %1856 = vst [vmem:[#allocation17_spill] sm:$0xff] %v1555_v16  ;;  %v1102_v18 = vmul.f32 -1.442695, %v330_v17  ;;  %v301_v57 = vmul.f32 0.0, %v1557_v3 }
  0xb6   :  { %1171 = vpow2.f32 %v1102_v18 }
  0xb7   :  { %1173 = vrcp.f32 %v348_v45 }
  0xb8   :  { %v1561_v34 = vpop.permute.xlu1 %263 }
  0xb9   :  { %v305_v55 = vmul.f32 0.0, %v1561_v34 }
  0xbb   :  { %v309_v56 = vadd.f32 %v305_v55, %v301_v57 }
  0xbd   :  { %v104_v60 = vpop.permute.xlu1 %103  ;;  %v317_v21 = vadd.f32 %v313_v59, %v309_v56 }
  0xbe   :  { %v113_v62 = vmul.f32 %v1430_v26, %v104_v60  ;;  %v117_v63 = vmul.f32 %v1435_v27, %v104_v60  ;;  %v121_v0 = vmul.f32 %v1444_v30, %v104_v60  ;;  %v125_v1 = vmul.f32 %v1449_v31, %v104_v60 }
  0xbf   :  { %v129_v4 = vmul.f32 %v1454_v32, %v104_v60  ;;  %v133_v5 = vmul.f32 %v1461_v35, %v104_v60  ;;  %v109_v7 = vmul.f32 %v1478_v46, %v104_v60  ;;  %v137_v8 = vmul.f32 %v1466_v36, %v104_v60 }
  0xc0   :  { %v1170_v6 = vpop.eup %1169  ;;  %v1574_v12 = vadd.f32 %v160_v61, %v113_v62  ;;  %v1576_v17 = vadd.f32 %v160_v61, %v117_v63  ;;  %v1578_v18 = vadd.f32 %v160_v61, %v121_v0  ;;  %v1580_v27 = vadd.f32 %v160_v61, %v125_v1 }
  0xc1   :  { %v347_v26 = vadd.f32 1.0, %v1170_v6  ;;  %v1582_v30 = vadd.f32 %v160_v61, %v129_v4  ;;  %v1584_v31 = vadd.f32 %v160_v61, %v133_v5  ;;  %v1586_v32 = vadd.f32 %v160_v61, %v137_v8 }
  0xc2   :  { %1857 = vst [vmem:[#allocation18_spill] sm:$0xff] %v1580_v27  ;;  %v1588_v35 = vpop.permute.xlu1 %295  ;;  %v165_v55 = vadd.f32 %v160_v61, %v109_v7  ;;  %v366_v61 = vlaneseq }
  0xc3   :  { %1858 = vst [vmem:[#allocation19_spill] sm:$0xff] %v1582_v30  ;;  %1859 = vst [vmem:[#allocation20_spill] sm:$0xff] %v1584_v31  ;;  %v1172_v46 = vpop.eup %1171  ;;  %v321_v36 = vmul.f32 0.0, %v1588_v35  ;;  %1175 = vrcp.f32 %v347_v26 }
  0xc4   :  { %1860 = vst [vmem:[#allocation21_spill] sm:$0xff] %v1586_v32  ;;  %v346_v45 = vadd.f32 1.0, %v1172_v46  ;;  %v1174_v63 = vpop.eup %1173  ;;  %v367_v7 = vshrl.u32 %v366_v61, 7 }
  0xc5   :  { %v325_v57 = vadd.f32 %v321_v36, %v317_v21  ;;  %v358_v0 = vmul.f32 2.0, %v1174_v63 }
  0xc6   :  { %1177 = vrcp.f32 %v346_v45  ;;  %v1594_v46 = vsub.s32 0, %v367_v7  ;;  %v1596_v21 = vsub.s32 1, %v367_v7  ;;  %v1598_v36 = vsub.s32 2, %v367_v7 }
  0xc7   :  { %v333_v60 = vadd.f32 %v325_v57, %v165_v55  ;;  %v1106_v4 = vadd.f32 -1.0, %v358_v0  ;;  %v1600_v55 = vsub.s32 3, %v367_v7 }
  0xc9   :  { %v1105_v62 = vmul.f32 -1.442695, %v333_v60 }
  0xcb   :  { %1179 = vpow2.f32 %v1105_v62 }
  0xd0   :  { %v1176_v1 = vpop.eup %1175 }
  0xd1   :  { %v360_v6 = vmul.f32 0.0, %v1176_v1 }
  0xd3   :  { %v1178_v5 = vpop.eup %1177 }
  0xd4   :  { %v361_v8 = vmul.f32 %v1178_v5, %v1106_v4 }
  0xd6   :  { %v1591_v32 = vadd.f32 %v361_v8, %v360_v6 }
  0xd8   :  { %v1180_v59 = vpop.eup %1179  ;;  %1181 = vtanh.f32 %v1591_v32 }
  0xd9   :  { %v349_v56 = vadd.f32 1.0, %v1180_v59 }
  0xdb   :  { %1183 = vrcp.f32 %v349_v56 }
  0xe5   :  { %v1182_v26 = vpop.eup %1181 }
  0xe8   :  { %v1184_v45 = vpop.eup %1183 }
  0xe9   :  { %v1602_v57 = vmul.f32 %v1184_v45, %v1182_v26 }
  0xeb   :  { %v369_v60 = vrot.slane %v1602_v57, %v1594_v46  ;;  %v377_v62 = vrot.slane %v1602_v57, %v1596_v21  ;;  %v389_v63 = vrot.slane %v1602_v57, %v1598_v36  ;;  %v401_v5 = vrot.slane %v1602_v57, %v1600_v55 }
  0xed   :  { %v370_v0 = vmul.f32 %v369_v60, %v1421_v23  ;;  %v371_v1 = vmul.f32 %v369_v60, %v1423_v24  ;;  %v372_v4 = vmul.f32 %v369_v60, %v1419_v22  ;;  %v378_v6 = vmul.f32 %v377_v62, %v1425_v25 }
  0xee   :  { %v379_v8 = vmul.f32 %v377_v62, %v1439_v29  ;;  %v380_v59 = vmul.f32 %v377_v62, %v1417_v20  ;;  %v390_v56 = vmul.f32 %v389_v63, %v1499_v58  ;;  %v391_v61 = vmul.f32 %v389_v63, %v1437_v28 }
  0xef   :  { %v382_v7 = vadd.f32 %v378_v6, %v370_v0  ;;  %v392_v54 = vmul.f32 %v389_v63, %v1415_v19  ;;  %v402_v43 = vmul.f32 %v401_v5, %v1504_v2  ;;  %v403_v16 = vmul.f32 %v401_v5, %v1532_v44 }
  0xf0   :  { %v383_v26 = vadd.f32 %v379_v8, %v371_v1  ;;  %v384_v45 = vadd.f32 %v380_v59, %v372_v4  ;;  %v404_v15 = vmul.f32 %v401_v5, %v1480_v47  ;;  %v373_v14 = vmul.f32 %v369_v60, %v1557_v3 }
  0xf1   :  { %v394_v31 = vadd.f32 %v390_v56, %v382_v7  ;;  %v381_v0 = vmul.f32 %v377_v62, %v1561_v34 }
  0xf2   :  { %v395_v53 = vadd.f32 %v391_v61, %v383_v26  ;;  %v396_v42 = vadd.f32 %v392_v54, %v384_v45  ;;  %v393_v54 = vmul.f32 %v389_v63, %v1559_v33 }
  0xf3   :  { %v406_v30 = vadd.f32 %v402_v43, %v394_v31  ;;  %v385_v61 = vadd.f32 %v381_v0, %v373_v14  ;;  %v1636_v0 = vpop.permute.xlu1 %979 }
  0xf4   :  { %v407_v52 = vadd.f32 %v403_v16, %v395_v53  ;;  %v408_v41 = vadd.f32 %v404_v15, %v396_v42  ;;  %v405_v42 = vmul.f32 %v401_v5, %v1588_v35 }
  0xf5   :  { %v415_v1 = vadd.f32 %v406_v30, %v1543_v9  ;;  %v397_v53 = vadd.f32 %v393_v54, %v385_v61 }
  0xf6   :  { %v416_v4 = vadd.f32 %v407_v52, %v1518_v37  ;;  %v417_v6 = vadd.f32 %v408_v41, %v1482_v48 }
  0xf7   :  { %v1107_v8 = vmul.f32 -1.442695, %v415_v1  ;;  %v409_v43 = vadd.f32 %v405_v42, %v397_v53  ;;  %v982_v1 = vmul.f32 %v1636_v0, %v1602_v57 }
  0xf8   :  { %v1108_v59 = vmul.f32 -1.442695, %v416_v4  ;;  %v1109_v56 = vmul.f32 -1.442695, %v417_v6 }
  0xf9   :  { %1185 = vpow2.f32 %v1107_v8  ;;  %v418_v15 = vadd.f32 %v409_v43, %v1574_v12  ;;  %v990_v4 = vrot.slane %v982_v1, 4 }
  0xfa   :  { %1187 = vpow2.f32 %v1108_v59 }
  0xfb   :  { %1189 = vpow2.f32 %v1109_v56  ;;  %v1110_v37 = vmul.f32 -1.442695, %v418_v15 }
 0x106   :  { %v1186_v9 = vpop.eup %1185 }
 0x107   :  { %v1188_v16 = vpop.eup %1187  ;;  %v431_v30 = vadd.f32 1.0, %v1186_v9 }
 0x108   :  { %v1190_v52 = vpop.eup %1189  ;;  %v432_v48 = vadd.f32 1.0, %v1188_v16 }
 0x109   :  { %v433_v41 = vadd.f32 1.0, %v1190_v52 }
 0x10a   :  { %1191 = vrcp.f32 %v432_v48 }
 0x10b   :  { %1193 = vrcp.f32 %v433_v41 }
 0x10c   :  { %1195 = vpow2.f32 %v1110_v37 }
 0x10d   :  { %1197 = vrcp.f32 %v431_v30 }
 0x117   :  { %v1192_v14 = vpop.eup %1191 }
 0x118   :  { %v1194_v31 = vpop.eup %1193  ;;  %v445_v60 = vmul.f32 %v1192_v14, %v1591_v32  ;;  %v991_v32 = vadd.f32 %v990_v4, %v982_v1 }
 0x119   :  { %v1196_v62 = vpop.eup %1195  ;;  %v443_v63 = vmul.f32 2.0, %v1194_v31 }
 0x11a   :  { %v1198_v7 = vpop.eup %1197  ;;  %v434_v12 = vadd.f32 1.0, %v1196_v62  ;;  %v992_v43 = vrot.slane %v991_v32, 2 }
 0x11b   :  { %v1111_v5 = vadd.f32 -1.0, %v443_v63 }
 0x11c   :  { %1199 = vrcp.f32 %v434_v12  ;;  %v993_v27 = vadd.f32 %v992_v43, %v991_v32 }
 0x11d   :  { %v446_v26 = vmul.f32 %v1198_v7, %v1111_v5 }
 0x11f   :  { %v1633_v45 = vadd.f32 %v446_v26, %v445_v60 }
 0x121   :  { %1201 = vtanh.f32 %v1633_v45 }
 0x129   :  { %v1200_v6 = vpop.eup %1199 }
 0x12e   :  { %v1202_v8 = vpop.eup %1201 }
 0x12f   :  { %v449_v59 = vmul.f32 %v1202_v8, %v1200_v6 }
 0x131   :  { %v455_v56 = vrot.slane %v449_v59, %v1594_v46  ;;  %v463_v61 = vrot.slane %v449_v59, %v1596_v21  ;;  %v475_v54 = vrot.slane %v449_v59, %v1598_v36  ;;  %v487_v53 = vrot.slane %v449_v59, %v1600_v55 }
 0x132   :  { %v983_v42 = vmul.f32 %v1636_v0, %v449_v59 }
 0x133   :  { %v456_v15 = vmul.f32 %v455_v56, %v1421_v23  ;;  %v457_v57 = vmul.f32 %v455_v56, %v1423_v24  ;;  %v458_v9 = vmul.f32 %v455_v56, %v1419_v22  ;;  %v459_v16 = vmul.f32 %v455_v56, %v1557_v3 }
 0x134   :  { %v464_v52 = vmul.f32 %v463_v61, %v1425_v25  ;;  %v465_v37 = vmul.f32 %v463_v61, %v1439_v29  ;;  %v466_v48 = vmul.f32 %v463_v61, %v1417_v20  ;;  %v467_v41 = vmul.f32 %v463_v61, %v1561_v34 }
 0x135   :  { %v476_v30 = vmul.f32 %v475_v54, %v1499_v58  ;;  %v477_v14 = vmul.f32 %v475_v54, %v1437_v28  ;;  %v478_v31 = vmul.f32 %v475_v54, %v1415_v19  ;;  %v479_v60 = vmul.f32 %v475_v54, %v1559_v33 }
 0x136   :  { %v468_v62 = vadd.f32 %v464_v52, %v456_v15  ;;  %v469_v63 = vadd.f32 %v465_v37, %v457_v57  ;;  %v470_v5 = vadd.f32 %v466_v48, %v458_v9  ;;  %v471_v7 = vadd.f32 %v467_v41, %v459_v16 }
 0x137   :  { %v488_v12 = vmul.f32 %v487_v53, %v1504_v2  ;;  %v489_v26 = vmul.f32 %v487_v53, %v1532_v44  ;;  %v490_v1 = vmul.f32 %v487_v53, %v1480_v47  ;;  %v491_v4 = vmul.f32 %v487_v53, %v1588_v35 }
 0x138   :  { %v480_v6 = vadd.f32 %v476_v30, %v468_v62  ;;  %v481_v8 = vadd.f32 %v477_v14, %v469_v63  ;;  %v482_v59 = vadd.f32 %v478_v31, %v470_v5  ;;  %v483_v56 = vadd.f32 %v479_v60, %v471_v7 }
 0x139   :  { %v996_v61 = vrot.slane %v983_v42, 4  ;;  %v994_v53 = vrot.slane %v993_v27, 1 }
 0x13a   :  { %v492_v51 = vadd.f32 %v488_v12, %v480_v6  ;;  %v493_v54 = vadd.f32 %v489_v26, %v481_v8  ;;  %v494_v15 = vadd.f32 %v490_v1, %v482_v59  ;;  %v495_v57 = vadd.f32 %v491_v4, %v483_v56 }
 0x13b   :  { %v997_v9 = vadd.f32 %v996_v61, %v983_v42  ;;  %v995_v32 = vadd.f32 %v994_v53, %v993_v27  ;;  %v1665_v42 = vpop.permute.xlu1 %1045 }
 0x13c   :  { %v501_v16 = vadd.f32 %v492_v51, %v1545_v10  ;;  %v502_v52 = vadd.f32 %v493_v54, %v1520_v38  ;;  %v503_v37 = vadd.f32 %v494_v15, %v1484_v49  ;;  %v504_v48 = vadd.f32 %v495_v57, %v1576_v17 }
 0x13d   :  { %v998_v41 = vrot.slane %v997_v9, 2  ;;  %v1048_v38 = vadd.f32 %v1665_v42, %v995_v32 }
 0x13e   :  { %v1112_v30 = vmul.f32 -1.442695, %v501_v16  ;;  %v1113_v14 = vmul.f32 -1.442695, %v502_v52  ;;  %v1114_v31 = vmul.f32 -1.442695, %v503_v37 }
 0x13f   :  { %v999_v60 = vadd.f32 %v998_v41, %v997_v9  ;;  %v1115_v5 = vmul.f32 -1.442695, %v504_v48 }
 0x140   :  { %1203 = vpow2.f32 %v1112_v30 }
 0x141   :  { %1205 = vpow2.f32 %v1113_v14  ;;  %v1000_v43 = vrot.slane %v999_v60, 1 }
 0x142   :  { %1207 = vpow2.f32 %v1114_v31 }
 0x143   :  { %v1001_v51 = vadd.f32 %v1000_v43, %v999_v60 }
 0x145   :  { %v1049_v49 = vadd.f32 %v1665_v42, %v1001_v51 }
 0x147   :  { %v1669_v10 = vsel %vm1064_vm0, %v1049_v49, %v1048_v38 }
 0x14d   :  { %v1204_v17 = vpop.eup %1203 }
 0x14e   :  { %v1206_v62 = vpop.eup %1205  ;;  %v517_v27 = vadd.f32 1.0, %v1204_v17 }
 0x14f   :  { %v1208_v63 = vpop.eup %1207  ;;  %v518_v7 = vadd.f32 1.0, %v1206_v62 }
 0x150   :  { %v519_v12 = vadd.f32 1.0, %v1208_v63 }
 0x151   :  { %1209 = vrcp.f32 %v518_v7 }
 0x152   :  { %1211 = vrcp.f32 %v519_v12 }
 0x153   :  { %1213 = vpow2.f32 %v1115_v5 }
 0x154   :  { %1215 = vrcp.f32 %v517_v27 }
 0x15e   :  { %v1210_v26 = vpop.eup %1209 }
 0x15f   :  { %v1212_v1 = vpop.eup %1211  ;;  %v531_v4 = vmul.f32 %v1210_v26, %v1633_v45 }
 0x160   :  { %v1214_v6 = vpop.eup %1213  ;;  %v529_v8 = vmul.f32 2.0, %v1212_v1 }
 0x161   :  { %v1216_v56 = vpop.eup %1215  ;;  %v520_v61 = vadd.f32 1.0, %v1214_v6 }
 0x162   :  { %v1116_v59 = vadd.f32 -1.0, %v529_v8 }
 0x163   :  { %1217 = vrcp.f32 %v520_v61 }
 0x164   :  { %v532_v54 = vmul.f32 %v1216_v56, %v1116_v59 }
 0x166   :  { %v1672_v15 = vadd.f32 %v532_v54, %v531_v4 }
 0x168   :  { %1219 = vtanh.f32 %v1672_v15 }
 0x170   :  { %v1218_v57 = vpop.eup %1217 }
 0x175   :  { %v1220_v9 = vpop.eup %1219 }
 0x176   :  { %v535_v16 = vmul.f32 %v1220_v9, %v1218_v57 }
 0x178   :  { %v541_v52 = vrot.slane %v535_v16, %v1594_v46  ;;  %v549_v37 = vrot.slane %v535_v16, %v1596_v21  ;;  %v561_v45 = vrot.slane %v535_v16, %v1598_v36  ;;  %v573_v48 = vrot.slane %v535_v16, %v1600_v55 }
 0x179   :  { %v984_v53 = vmul.f32 %v1636_v0, %v535_v16 }
 0x17a   :  { %v542_v41 = vmul.f32 %v541_v52, %v1421_v23  ;;  %v543_v30 = vmul.f32 %v541_v52, %v1423_v24  ;;  %v544_v14 = vmul.f32 %v541_v52, %v1419_v22  ;;  %v545_v31 = vmul.f32 %v541_v52, %v1557_v3 }
 0x17b   :  { %v550_v60 = vmul.f32 %v549_v37, %v1425_v25  ;;  %v551_v32 = vmul.f32 %v549_v37, %v1439_v29  ;;  %v552_v43 = vmul.f32 %v549_v37, %v1417_v20  ;;  %v553_v51 = vmul.f32 %v549_v37, %v1561_v34 }
 0x17c   :  { %v562_v38 = vmul.f32 %v561_v45, %v1499_v58  ;;  %v563_v49 = vmul.f32 %v561_v45, %v1437_v28  ;;  %v564_v17 = vmul.f32 %v561_v45, %v1415_v19  ;;  %v565_v62 = vmul.f32 %v561_v45, %v1559_v33 }
 0x17d   :  { %v554_v63 = vadd.f32 %v550_v60, %v542_v41  ;;  %v555_v5 = vadd.f32 %v551_v32, %v543_v30  ;;  %v556_v7 = vadd.f32 %v552_v43, %v544_v14  ;;  %v557_v12 = vadd.f32 %v553_v51, %v545_v31 }
 0x17e   :  { %v574_v27 = vmul.f32 %v573_v48, %v1504_v2  ;;  %v575_v26 = vmul.f32 %v573_v48, %v1532_v44  ;;  %v576_v1 = vmul.f32 %v573_v48, %v1480_v47  ;;  %v577_v4 = vmul.f32 %v573_v48, %v1588_v35 }
 0x17f   :  { %v566_v6 = vadd.f32 %v562_v38, %v554_v63  ;;  %v567_v8 = vadd.f32 %v563_v49, %v555_v5  ;;  %v568_v59 = vadd.f32 %v564_v17, %v556_v7  ;;  %v569_v56 = vadd.f32 %v565_v62, %v557_v12 }
 0x180   :  { %v1002_v61 = vrot.slane %v984_v53, 4 }
 0x181   :  { %v578_v54 = vadd.f32 %v574_v27, %v566_v6  ;;  %v579_v57 = vadd.f32 %v575_v26, %v567_v8  ;;  %v580_v9 = vadd.f32 %v576_v1, %v568_v59  ;;  %v581_v16 = vadd.f32 %v577_v4, %v569_v56 }
 0x182   :  { %v1003_v52 = vadd.f32 %v1002_v61, %v984_v53 }
 0x183   :  { %v587_v37 = vadd.f32 %v578_v54, %v1547_v11  ;;  %v588_v45 = vadd.f32 %v579_v57, %v1522_v39  ;;  %v589_v41 = vadd.f32 %v580_v9, %v1486_v50  ;;  %v590_v30 = vadd.f32 %v581_v16, %v1578_v18 }
 0x184   :  { %v1004_v14 = vrot.slane %v1003_v52, 2 }
 0x185   :  { %v1117_v48 = vmul.f32 -1.442695, %v587_v37  ;;  %v1118_v31 = vmul.f32 -1.442695, %v588_v45  ;;  %v1119_v60 = vmul.f32 -1.442695, %v589_v41 }
 0x186   :  { %v1005_v32 = vadd.f32 %v1004_v14, %v1003_v52  ;;  %v1120_v18 = vmul.f32 -1.442695, %v590_v30 }
 0x187   :  { %1221 = vpow2.f32 %v1117_v48 }
 0x188   :  { %1223 = vpow2.f32 %v1118_v31  ;;  %v1006_v43 = vrot.slane %v1005_v32, 1 }
 0x189   :  { %1225 = vpow2.f32 %v1119_v60 }
 0x18a   :  { %v1007_v51 = vadd.f32 %v1006_v43, %v1005_v32 }
 0x18c   :  { %v1050_v53 = vadd.f32 %v1665_v42, %v1007_v51 }
 0x18e   :  { %v1702_v11 = vsel %vm1066_vm1, %v1050_v53, %v1669_v10 }
 0x194   :  { %v1222_v39 = vpop.eup %1221 }
 0x195   :  { %v1224_v50 = vpop.eup %1223  ;;  %v603_v62 = vadd.f32 1.0, %v1222_v39 }
 0x196   :  { %v1226_v38 = vpop.eup %1225  ;;  %v604_v49 = vadd.f32 1.0, %v1224_v50 }
 0x197   :  { %v605_v17 = vadd.f32 1.0, %v1226_v38 }
 0x198   :  { %1227 = vrcp.f32 %v604_v49 }
 0x199   :  { %1229 = vrcp.f32 %v605_v17 }
 0x19a   :  { %1231 = vpow2.f32 %v1120_v18 }
 0x19b   :  { %1233 = vrcp.f32 %v603_v62 }
 0x1a5   :  { %v1228_v63 = vpop.eup %1227 }
 0x1a6   :  { %v1230_v5 = vpop.eup %1229  ;;  %v617_v7 = vmul.f32 %v1228_v63, %v1672_v15 }
 0x1a7   :  { %v1232_v12 = vpop.eup %1231  ;;  %v615_v27 = vmul.f32 2.0, %v1230_v5 }
 0x1a8   :  { %v1234_v10 = vpop.eup %1233  ;;  %v606_v1 = vadd.f32 1.0, %v1232_v12 }
 0x1a9   :  { %v1121_v26 = vadd.f32 -1.0, %v615_v27 }
 0x1aa   :  { %1235 = vrcp.f32 %v606_v1 }
 0x1ab   :  { %v618_v4 = vmul.f32 %v1234_v10, %v1121_v26 }
 0x1ad   :  { %v1705_v6 = vadd.f32 %v618_v4, %v617_v7 }
 0x1af   :  { %1237 = vtanh.f32 %v1705_v6 }
 0x1b7   :  { %v1236_v8 = vpop.eup %1235 }
 0x1bc   :  { %v1238_v59 = vpop.eup %1237 }
 0x1bd   :  { %v621_v56 = vmul.f32 %v1238_v59, %v1236_v8 }
 0x1bf   :  { %v627_v61 = vrot.slane %v621_v56, %v1594_v46  ;;  %v635_v54 = vrot.slane %v621_v56, %v1596_v21  ;;  %v647_v15 = vrot.slane %v621_v56, %v1598_v36  ;;  %v659_v57 = vrot.slane %v621_v56, %v1600_v55 }
 0x1c0   :  { %v985_v9 = vmul.f32 %v1636_v0, %v621_v56  ;;  %v1861_v56 = vld [vmem:[#allocation8_spill] sm:$0xff] }
 0x1c1   :  { %v628_v16 = vmul.f32 %v627_v61, %v1421_v23  ;;  %v629_v52 = vmul.f32 %v627_v61, %v1423_v24  ;;  %v630_v37 = vmul.f32 %v627_v61, %v1419_v22  ;;  %v631_v45 = vmul.f32 %v627_v61, %v1557_v3 }
 0x1c2   :  { %v636_v41 = vmul.f32 %v635_v54, %v1425_v25  ;;  %v637_v30 = vmul.f32 %v635_v54, %v1439_v29  ;;  %v638_v14 = vmul.f32 %v635_v54, %v1417_v20  ;;  %v639_v48 = vmul.f32 %v635_v54, %v1561_v34  ;;  %v1862_v54 = vld [vmem:[#allocation18_spill] sm:$0xff] }
 0x1c3   :  { %v648_v31 = vmul.f32 %v647_v15, %v1499_v58  ;;  %v649_v60 = vmul.f32 %v647_v15, %v1437_v28  ;;  %v650_v32 = vmul.f32 %v647_v15, %v1415_v19  ;;  %v651_v43 = vmul.f32 %v647_v15, %v1559_v33 }
 0x1c4   :  { %v640_v51 = vadd.f32 %v636_v41, %v628_v16  ;;  %v641_v53 = vadd.f32 %v637_v30, %v629_v52  ;;  %v642_v39 = vadd.f32 %v638_v14, %v630_v37  ;;  %v643_v50 = vadd.f32 %v639_v48, %v631_v45 }
 0x1c5   :  { %v660_v38 = vmul.f32 %v659_v57, %v1504_v2  ;;  %v661_v18 = vmul.f32 %v659_v57, %v1532_v44  ;;  %v662_v49 = vmul.f32 %v659_v57, %v1480_v47  ;;  %v663_v17 = vmul.f32 %v659_v57, %v1588_v35 }
 0x1c6   :  { %v652_v62 = vadd.f32 %v648_v31, %v640_v51  ;;  %v653_v63 = vadd.f32 %v649_v60, %v641_v53  ;;  %v654_v5 = vadd.f32 %v650_v32, %v642_v39  ;;  %v655_v7 = vadd.f32 %v651_v43, %v643_v50 }
 0x1c7   :  { %v1008_v12 = vrot.slane %v985_v9, 4 }
 0x1c8   :  { %v664_v27 = vadd.f32 %v660_v38, %v652_v62  ;;  %v665_v26 = vadd.f32 %v661_v18, %v653_v63  ;;  %v666_v10 = vadd.f32 %v662_v49, %v654_v5  ;;  %v667_v1 = vadd.f32 %v663_v17, %v655_v7 }
 0x1c9   :  { %v1009_v4 = vadd.f32 %v1008_v12, %v985_v9 }
 0x1ca   :  { %v673_v8 = vadd.f32 %v664_v27, %v1549_v13  ;;  %v674_v59 = vadd.f32 %v665_v26, %v1524_v40  ;;  %v675_v61 = vadd.f32 %v666_v10, %v1861_v56  ;;  %v676_v15 = vadd.f32 %v667_v1, %v1862_v54 }
 0x1cb   :  { %v1010_v16 = vrot.slane %v1009_v4, 2 }
 0x1cc   :  { %v1122_v57 = vmul.f32 -1.442695, %v673_v8  ;;  %v1123_v52 = vmul.f32 -1.442695, %v674_v59  ;;  %v1124_v37 = vmul.f32 -1.442695, %v675_v61 }
 0x1cd   :  { %v1011_v45 = vadd.f32 %v1010_v16, %v1009_v4  ;;  %v1125_v31 = vmul.f32 -1.442695, %v676_v15 }
 0x1ce   :  { %1239 = vpow2.f32 %v1122_v57 }
 0x1cf   :  { %1241 = vpow2.f32 %v1123_v52  ;;  %v1012_v41 = vrot.slane %v1011_v45, 1 }
 0x1d0   :  { %1243 = vpow2.f32 %v1124_v37 }
 0x1d1   :  { %v1013_v30 = vadd.f32 %v1012_v41, %v1011_v45 }
 0x1d3   :  { %v1051_v9 = vadd.f32 %v1665_v42, %v1013_v30 }
 0x1d5   :  { %v1735_v13 = vsel %vm1068_vm2, %v1051_v9, %v1702_v11 }
 0x1db   :  { %v1240_v40 = vpop.eup %1239 }
 0x1dc   :  { %v1242_v14 = vpop.eup %1241  ;;  %v689_v43 = vadd.f32 1.0, %v1240_v40 }
 0x1dd   :  { %v1244_v48 = vpop.eup %1243  ;;  %v690_v60 = vadd.f32 1.0, %v1242_v14 }
 0x1de   :  { %v691_v32 = vadd.f32 1.0, %v1244_v48 }
 0x1df   :  { %1245 = vrcp.f32 %v690_v60 }
 0x1e0   :  { %1247 = vrcp.f32 %v691_v32 }
 0x1e1   :  { %1249 = vpow2.f32 %v1125_v31 }
 0x1e2   :  { %1251 = vrcp.f32 %v689_v43 }
 0x1ec   :  { %v1246_v51 = vpop.eup %1245 }
 0x1ed   :  { %v1248_v53 = vpop.eup %1247  ;;  %v703_v39 = vmul.f32 %v1246_v51, %v1705_v6 }
 0x1ee   :  { %v1250_v50 = vpop.eup %1249  ;;  %v701_v38 = vmul.f32 2.0, %v1248_v53 }
 0x1ef   :  { %v1252_v11 = vpop.eup %1251  ;;  %v692_v49 = vadd.f32 1.0, %v1250_v50 }
 0x1f0   :  { %v1126_v18 = vadd.f32 -1.0, %v701_v38 }
 0x1f1   :  { %1253 = vrcp.f32 %v692_v49  ;;  %v1863_v49 = vld [vmem:[#allocation15_spill] sm:$0xff] }
 0x1f2   :  { %v704_v17 = vmul.f32 %v1252_v11, %v1126_v18 }
 0x1f4   :  { %v1738_v62 = vadd.f32 %v704_v17, %v703_v39 }
 0x1f6   :  { %1255 = vtanh.f32 %v1738_v62 }
 0x1fe   :  { %v1254_v63 = vpop.eup %1253 }
 0x203   :  { %v1256_v5 = vpop.eup %1255 }
 0x204   :  { %v707_v7 = vmul.f32 %v1256_v5, %v1254_v63  ;;  %v1864_v63 = vld [vmem:[#allocation12_spill] sm:$0xff] }
 0x206   :  { %v713_v12 = vrot.slane %v707_v7, %v1594_v46  ;;  %v721_v27 = vrot.slane %v707_v7, %v1596_v21  ;;  %v733_v6 = vrot.slane %v707_v7, %v1598_v36  ;;  %v745_v26 = vrot.slane %v707_v7, %v1600_v55 }
 0x207   :  { %v986_v10 = vmul.f32 %v1636_v0, %v707_v7  ;;  %v1865_v7 = vld [vmem:[#allocation9_spill] sm:$0xff] }
 0x208   :  { %v714_v1 = vmul.f32 %v713_v12, %v1421_v23  ;;  %v715_v4 = vmul.f32 %v713_v12, %v1423_v24  ;;  %v716_v8 = vmul.f32 %v713_v12, %v1419_v22  ;;  %v717_v59 = vmul.f32 %v713_v12, %v1557_v3 }
 0x209   :  { %v722_v56 = vmul.f32 %v721_v27, %v1425_v25  ;;  %v723_v61 = vmul.f32 %v721_v27, %v1439_v29  ;;  %v724_v54 = vmul.f32 %v721_v27, %v1417_v20  ;;  %v725_v15 = vmul.f32 %v721_v27, %v1561_v34  ;;  %v1866_v27 = vld [vmem:[#allocation19_spill] sm:$0xff] }
 0x20a   :  { %v734_v16 = vmul.f32 %v733_v6, %v1499_v58  ;;  %v735_v57 = vmul.f32 %v733_v6, %v1437_v28  ;;  %v736_v52 = vmul.f32 %v733_v6, %v1415_v19  ;;  %v737_v37 = vmul.f32 %v733_v6, %v1559_v33 }
 0x20b   :  { %v726_v45 = vadd.f32 %v722_v56, %v714_v1  ;;  %v727_v41 = vadd.f32 %v723_v61, %v715_v4  ;;  %v728_v30 = vadd.f32 %v724_v54, %v716_v8  ;;  %v729_v9 = vadd.f32 %v725_v15, %v717_v59 }
 0x20c   :  { %v746_v40 = vmul.f32 %v745_v26, %v1504_v2  ;;  %v747_v14 = vmul.f32 %v745_v26, %v1532_v44  ;;  %v748_v48 = vmul.f32 %v745_v26, %v1480_v47  ;;  %v749_v31 = vmul.f32 %v745_v26, %v1588_v35 }
 0x20d   :  { %v738_v60 = vadd.f32 %v734_v16, %v726_v45  ;;  %v739_v32 = vadd.f32 %v735_v57, %v727_v41  ;;  %v740_v43 = vadd.f32 %v736_v52, %v728_v30  ;;  %v741_v51 = vadd.f32 %v737_v37, %v729_v9 }
 0x20e   :  { %v1014_v53 = vrot.slane %v986_v10, 4 }
 0x20f   :  { %v750_v39 = vadd.f32 %v746_v40, %v738_v60  ;;  %v751_v50 = vadd.f32 %v747_v14, %v739_v32  ;;  %v752_v38 = vadd.f32 %v748_v48, %v740_v43  ;;  %v753_v18 = vadd.f32 %v749_v31, %v741_v51 }
 0x210   :  { %v1015_v11 = vadd.f32 %v1014_v53, %v986_v10 }
 0x211   :  { %v759_v17 = vadd.f32 %v750_v39, %v1863_v49  ;;  %v760_v5 = vadd.f32 %v751_v50, %v1864_v63  ;;  %v761_v12 = vadd.f32 %v752_v38, %v1865_v7  ;;  %v762_v6 = vadd.f32 %v753_v18, %v1866_v27 }
 0x212   :  { %v1016_v1 = vrot.slane %v1015_v11, 2 }
 0x213   :  { %v1127_v26 = vmul.f32 -1.442695, %v759_v17  ;;  %v1128_v4 = vmul.f32 -1.442695, %v760_v5  ;;  %v1129_v8 = vmul.f32 -1.442695, %v761_v12 }
 0x214   :  { %v1017_v59 = vadd.f32 %v1016_v1, %v1015_v11  ;;  %v1130_v52 = vmul.f32 -1.442695, %v762_v6 }
 0x215   :  { %1257 = vpow2.f32 %v1127_v26 }
 0x216   :  { %1259 = vpow2.f32 %v1128_v4  ;;  %v1018_v56 = vrot.slane %v1017_v59, 1 }
 0x217   :  { %1261 = vpow2.f32 %v1129_v8 }
 0x218   :  { %v1019_v61 = vadd.f32 %v1018_v56, %v1017_v59 }
 0x21a   :  { %v1052_v10 = vadd.f32 %v1665_v42, %v1019_v61 }
 0x21c   :  { %v1768_v54 = vsel %vm1070_vm3, %v1052_v10, %v1735_v13 }
 0x222   :  { %v1258_v15 = vpop.eup %1257 }
 0x223   :  { %v1260_v16 = vpop.eup %1259  ;;  %v775_v41 = vadd.f32 1.0, %v1258_v15 }
 0x224   :  { %v1262_v57 = vpop.eup %1261  ;;  %v776_v37 = vadd.f32 1.0, %v1260_v16 }
 0x225   :  { %v777_v45 = vadd.f32 1.0, %v1262_v57 }
 0x226   :  { %1263 = vrcp.f32 %v776_v37 }
 0x227   :  { %1265 = vrcp.f32 %v777_v45 }
 0x228   :  { %1267 = vpow2.f32 %v1130_v52 }
 0x229   :  { %1269 = vrcp.f32 %v775_v41 }
 0x233   :  { %v1264_v30 = vpop.eup %1263 }
 0x234   :  { %v1266_v9 = vpop.eup %1265  ;;  %v789_v40 = vmul.f32 %v1264_v30, %v1738_v62 }
 0x235   :  { %v1268_v14 = vpop.eup %1267  ;;  %v787_v48 = vmul.f32 2.0, %v1266_v9 }
 0x236   :  { %v1270_v13 = vpop.eup %1269  ;;  %v778_v60 = vadd.f32 1.0, %v1268_v14 }
 0x237   :  { %v1131_v31 = vadd.f32 -1.0, %v787_v48 }
 0x238   :  { %1271 = vrcp.f32 %v778_v60  ;;  %v1867_v60 = vld [vmem:[#allocation16_spill] sm:$0xff] }
 0x239   :  { %v790_v32 = vmul.f32 %v1270_v13, %v1131_v31 }
 0x23b   :  { %v1771_v43 = vadd.f32 %v790_v32, %v789_v40 }
 0x23d   :  { %1273 = vtanh.f32 %v1771_v43 }
 0x245   :  { %v1272_v51 = vpop.eup %1271 }
 0x24a   :  { %v1274_v53 = vpop.eup %1273 }
 0x24b   :  { %v793_v39 = vmul.f32 %v1274_v53, %v1272_v51  ;;  %v1868_v51 = vld [vmem:[#allocation13_spill] sm:$0xff] }
 0x24d   :  { %v799_v50 = vrot.slane %v793_v39, %v1594_v46  ;;  %v807_v38 = vrot.slane %v793_v39, %v1596_v21  ;;  %v819_v62 = vrot.slane %v793_v39, %v1598_v36  ;;  %v831_v18 = vrot.slane %v793_v39, %v1600_v55 }
 0x24e   :  { %v987_v11 = vmul.f32 %v1636_v0, %v793_v39  ;;  %v1869_v39 = vld [vmem:[#allocation10_spill] sm:$0xff] }
 0x24f   :  { %v800_v49 = vmul.f32 %v799_v50, %v1421_v23  ;;  %v801_v17 = vmul.f32 %v799_v50, %v1423_v24  ;;  %v802_v63 = vmul.f32 %v799_v50, %v1419_v22  ;;  %v803_v5 = vmul.f32 %v799_v50, %v1557_v3 }
 0x250   :  { %v808_v7 = vmul.f32 %v807_v38, %v1425_v25  ;;  %v809_v12 = vmul.f32 %v807_v38, %v1439_v29  ;;  %v810_v27 = vmul.f32 %v807_v38, %v1417_v20  ;;  %v811_v6 = vmul.f32 %v807_v38, %v1561_v34  ;;  %v1870_v38 = vld [vmem:[#allocation20_spill] sm:$0xff] }
 0x251   :  { %v820_v1 = vmul.f32 %v819_v62, %v1499_v58  ;;  %v821_v26 = vmul.f32 %v819_v62, %v1437_v28  ;;  %v822_v4 = vmul.f32 %v819_v62, %v1415_v19  ;;  %v823_v8 = vmul.f32 %v819_v62, %v1559_v33 }
 0x252   :  { %v812_v59 = vadd.f32 %v808_v7, %v800_v49  ;;  %v813_v56 = vadd.f32 %v809_v12, %v801_v17  ;;  %v814_v61 = vadd.f32 %v810_v27, %v802_v63  ;;  %v815_v10 = vadd.f32 %v811_v6, %v803_v5 }
 0x253   :  { %v832_v15 = vmul.f32 %v831_v18, %v1504_v2  ;;  %v833_v16 = vmul.f32 %v831_v18, %v1532_v44  ;;  %v834_v57 = vmul.f32 %v831_v18, %v1480_v47  ;;  %v835_v52 = vmul.f32 %v831_v18, %v1588_v35 }
 0x254   :  { %v824_v37 = vadd.f32 %v820_v1, %v812_v59  ;;  %v825_v45 = vadd.f32 %v821_v26, %v813_v56  ;;  %v826_v41 = vadd.f32 %v822_v4, %v814_v61  ;;  %v827_v30 = vadd.f32 %v823_v8, %v815_v10 }
 0x255   :  { %v1020_v9 = vrot.slane %v987_v11, 4 }
 0x256   :  { %v836_v40 = vadd.f32 %v832_v15, %v824_v37  ;;  %v837_v14 = vadd.f32 %v833_v16, %v825_v45  ;;  %v838_v48 = vadd.f32 %v834_v57, %v826_v41  ;;  %v839_v31 = vadd.f32 %v835_v52, %v827_v30 }
 0x257   :  { %v1021_v13 = vadd.f32 %v1020_v9, %v987_v11 }
 0x258   :  { %v845_v32 = vadd.f32 %v836_v40, %v1867_v60  ;;  %v846_v53 = vadd.f32 %v837_v14, %v1868_v51  ;;  %v847_v50 = vadd.f32 %v838_v48, %v1869_v39  ;;  %v848_v62 = vadd.f32 %v839_v31, %v1870_v38 }
 0x259   :  { %v1022_v49 = vrot.slane %v1021_v13, 2 }
 0x25a   :  { %v1132_v18 = vmul.f32 -1.442695, %v845_v32  ;;  %v1133_v17 = vmul.f32 -1.442695, %v846_v53  ;;  %v1134_v63 = vmul.f32 -1.442695, %v847_v50 }
 0x25b   :  { %v1023_v5 = vadd.f32 %v1022_v49, %v1021_v13  ;;  %v1135_v4 = vmul.f32 -1.442695, %v848_v62 }
 0x25c   :  { %1275 = vpow2.f32 %v1132_v18 }
 0x25d   :  { %1277 = vpow2.f32 %v1133_v17  ;;  %v1024_v7 = vrot.slane %v1023_v5, 1 }
 0x25e   :  { %1279 = vpow2.f32 %v1134_v63 }
 0x25f   :  { %v1025_v12 = vadd.f32 %v1024_v7, %v1023_v5 }
 0x261   :  { %v1053_v11 = vadd.f32 %v1665_v42, %v1025_v12  ;;  %v1871_v12 = vld [vmem:[#allocation17_spill] sm:$0xff] }
 0x263   :  { %v1801_v27 = vsel %vm1072_vm4, %v1053_v11, %v1768_v54 }
 0x269   :  { %v1276_v6 = vpop.eup %1275 }
 0x26a   :  { %v1278_v1 = vpop.eup %1277  ;;  %v861_v56 = vadd.f32 1.0, %v1276_v6  ;;  %v1872_v6 = vld [vmem:[#allocation14_spill] sm:$0xff] }
 0x26b   :  { %v1280_v26 = vpop.eup %1279  ;;  %v862_v8 = vadd.f32 1.0, %v1278_v1  ;;  %v1873_v1 = vld [vmem:[#allocation11_spill] sm:$0xff] }
 0x26c   :  { %v863_v59 = vadd.f32 1.0, %v1280_v26  ;;  %v1874_v26 = vld [vmem:[#allocation21_spill] sm:$0xff] }
 0x26d   :  { %1281 = vrcp.f32 %v862_v8 }
 0x26e   :  { %1283 = vrcp.f32 %v863_v59 }
 0x26f   :  { %1285 = vpow2.f32 %v1135_v4 }
 0x270   :  { %1287 = vrcp.f32 %v861_v56 }
 0x27a   :  { %v1282_v61 = vpop.eup %1281 }
 0x27b   :  { %v1284_v10 = vpop.eup %1283  ;;  %v875_v15 = vmul.f32 %v1282_v61, %v1771_v43 }
 0x27c   :  { %v1286_v16 = vpop.eup %1285  ;;  %v873_v57 = vmul.f32 2.0, %v1284_v10 }
 0x27d   :  { %v1288_v54 = vpop.eup %1287  ;;  %v864_v37 = vadd.f32 1.0, %v1286_v16 }
 0x27e   :  { %v1136_v52 = vadd.f32 -1.0, %v873_v57 }
 0x27f   :  { %1289 = vrcp.f32 %v864_v37 }
 0x280   :  { %v876_v45 = vmul.f32 %v1288_v54, %v1136_v52 }
 0x282   :  { %v1804_v41 = vadd.f32 %v876_v45, %v875_v15 }
 0x284   :  { %1291 = vtanh.f32 %v1804_v41 }
 0x28c   :  { %v1290_v30 = vpop.eup %1289 }
 0x291   :  { %v1292_v9 = vpop.eup %1291 }
 0x292   :  { %v879_v40 = vmul.f32 %v1292_v9, %v1290_v30 }
 0x294   :  { %v885_v14 = vrot.slane %v879_v40, %v1594_v46  ;;  %v893_v48 = vrot.slane %v879_v40, %v1596_v21  ;;  %v905_v43 = vrot.slane %v879_v40, %v1598_v36  ;;  %v917_v31 = vrot.slane %v879_v40, %v1600_v55 }
 0x295   :  { %v988_v13 = vmul.f32 %v1636_v0, %v879_v40 }
 0x296   :  { %v886_v60 = vmul.f32 %v885_v14, %v1421_v23  ;;  %v887_v32 = vmul.f32 %v885_v14, %v1423_v24  ;;  %v888_v51 = vmul.f32 %v885_v14, %v1419_v22  ;;  %v889_v53 = vmul.f32 %v885_v14, %v1557_v3 }
 0x297   :  { %v894_v39 = vmul.f32 %v893_v48, %v1425_v25  ;;  %v895_v46 = vmul.f32 %v893_v48, %v1439_v29  ;;  %v896_v21 = vmul.f32 %v893_v48, %v1417_v20  ;;  %v897_v36 = vmul.f32 %v893_v48, %v1561_v34 }
 0x298   :  { %v906_v55 = vmul.f32 %v905_v43, %v1499_v58  ;;  %v907_v50 = vmul.f32 %v905_v43, %v1437_v28  ;;  %v908_v23 = vmul.f32 %v905_v43, %v1415_v19  ;;  %v909_v24 = vmul.f32 %v905_v43, %v1559_v33 }
 0x299   :  { %v898_v38 = vadd.f32 %v894_v39, %v886_v60  ;;  %v899_v22 = vadd.f32 %v895_v46, %v887_v32  ;;  %v900_v62 = vadd.f32 %v896_v21, %v888_v51  ;;  %v901_v3 = vadd.f32 %v897_v36, %v889_v53 }
 0x29a   :  { %v918_v25 = vmul.f32 %v917_v31, %v1504_v2  ;;  %v919_v29 = vmul.f32 %v917_v31, %v1532_v44  ;;  %v920_v20 = vmul.f32 %v917_v31, %v1480_v47  ;;  %v921_v34 = vmul.f32 %v917_v31, %v1588_v35 }
 0x29b   :  { %v910_v49 = vadd.f32 %v906_v55, %v898_v38  ;;  %v911_v58 = vadd.f32 %v907_v50, %v899_v22  ;;  %v912_v18 = vadd.f32 %v908_v23, %v900_v62  ;;  %v913_v28 = vadd.f32 %v909_v24, %v901_v3 }
 0x29c   :  { %v1026_v17 = vrot.slane %v988_v13, 4 }
 0x29d   :  { %v922_v19 = vadd.f32 %v918_v25, %v910_v49  ;;  %v923_v63 = vadd.f32 %v919_v29, %v911_v58  ;;  %v924_v33 = vadd.f32 %v920_v20, %v912_v18  ;;  %v925_v5 = vadd.f32 %v921_v34, %v913_v28 }
 0x29e   :  { %v1027_v7 = vadd.f32 %v1026_v17, %v988_v13 }
 0x29f   :  { %v931_v11 = vadd.f32 %v922_v19, %v1871_v12  ;;  %v932_v2 = vadd.f32 %v923_v63, %v1872_v6  ;;  %v933_v44 = vadd.f32 %v924_v33, %v1873_v1  ;;  %v934_v47 = vadd.f32 %v925_v5, %v1874_v26 }
 0x2a0   :  { %v1028_v4 = vrot.slane %v1027_v7, 2 }
 0x2a1   :  { %v1137_v35 = vmul.f32 -1.442695, %v931_v11  ;;  %v1138_v8 = vmul.f32 -1.442695, %v932_v2  ;;  %v1139_v59 = vmul.f32 -1.442695, %v933_v44 }
 0x2a2   :  { %v1029_v56 = vadd.f32 %v1028_v4, %v1027_v7  ;;  %v1140_v37 = vmul.f32 -1.442695, %v934_v47 }
 0x2a3   :  { %1293 = vpow2.f32 %v1137_v35 }
 0x2a4   :  { %1295 = vpow2.f32 %v1138_v8  ;;  %v1030_v61 = vrot.slane %v1029_v56, 1 }
 0x2a5   :  { %1297 = vpow2.f32 %v1139_v59 }
 0x2a6   :  { %v1031_v10 = vadd.f32 %v1030_v61, %v1029_v56 }
 0x2a8   :  { %v1054_v15 = vadd.f32 %v1665_v42, %v1031_v10 }
 0x2aa   :  { %v1075_v16 = vsel %vm1074_vm5, %v1054_v15, %v1801_v27 }
 0x2b0   :  { %v1294_v57 = vpop.eup %1293 }
 0x2b1   :  { %v1296_v52 = vpop.eup %1295  ;;  %v947_v9 = vadd.f32 1.0, %v1294_v57 }
 0x2b2   :  { %v1298_v54 = vpop.eup %1297  ;;  %v948_v45 = vadd.f32 1.0, %v1296_v52 }
 0x2b3   :  { %v949_v30 = vadd.f32 1.0, %v1298_v54 }
 0x2b4   :  { %1299 = vrcp.f32 %v948_v45 }
 0x2b5   :  { %1301 = vrcp.f32 %v949_v30 }
 0x2b6   :  { %1303 = vpow2.f32 %v1140_v37 }
 0x2b7   :  { %1305 = vrcp.f32 %v947_v9 }
 0x2c1   :  { %v1300_v40 = vpop.eup %1299 }
 0x2c2   :  { %v1302_v14 = vpop.eup %1301  ;;  %v961_v48 = vmul.f32 %v1300_v40, %v1804_v41 }
 0x2c3   :  { %v1304_v43 = vpop.eup %1303  ;;  %v959_v31 = vmul.f32 2.0, %v1302_v14 }
 0x2c4   :  { %v1306_v60 = vpop.eup %1305  ;;  %v950_v27 = vadd.f32 1.0, %v1304_v43 }
 0x2c5   :  { %v1141_v13 = vadd.f32 -1.0, %v959_v31 }
 0x2c6   :  { %1307 = vrcp.f32 %v950_v27 }
 0x2c7   :  { %v962_v32 = vmul.f32 %v1306_v60, %v1141_v13 }
 0x2c9   :  { %v963_v51 = vadd.f32 %v962_v32, %v961_v48 }
 0x2cb   :  { %1309 = vtanh.f32 %v963_v51 }
 0x2d3   :  { %v1308_v53 = vpop.eup %1307 }
 0x2d8   :  { %v1310_v39 = vpop.eup %1309 }
 0x2d9   :  { %v965_v46 = vmul.f32 %v1310_v39, %v1308_v53 }
 0x2db   :  { %v989_v21 = vmul.f32 %v1636_v0, %v965_v46 }
 0x2dd   :  { %v1032_v36 = vrot.slane %v989_v21, 4 }
 0x2df   :  { %v1033_v55 = vadd.f32 %v1032_v36, %v989_v21 }
 0x2e1   :  { %v1034_v50 = vrot.slane %v1033_v55, 2 }
 0x2e3   :  { %v1035_v23 = vadd.f32 %v1034_v50, %v1033_v55 }
 0x2e5   :  { %v1036_v24 = vrot.slane %v1035_v23, 1 }
 0x2e7   :  { %v1037_v41 = vadd.f32 %v1036_v24, %v1035_v23 }
 0x2e9   :  { %v1055_v38 = vadd.f32 %v1665_v42, %v1037_v41 }
 0x2eb   :  { %v1077_v22 = vsel %vm1076_vm6, %v1055_v38, %v1075_v16 }
 0x2ec   :  { %1079 = vst [vmem:[#allocation5] sm:$0xff] %v1077_v22 }
 0x2ed   :  { %1322 = shalt.err (!%p1319_p4)
}
 0x2ee   :  { %1089 = dma.vmem_to_hbm [thread:$0]  %s1087_s11, 128, %s1846_s6, [#allocation6]  }
 0x2ef   :  { %1331 = dma.done.wait [#allocation6], 128  }
 0x2f0   :  { %1332 = vsyncadd [#allocation6], 4294967168 }
 0x2f1   :  { %1093 = vsyncpa [#allocation6], 1 }

</bundles_post_ra>
